<compile_context>
chip_gen: v5e
topology: v5e:2x2
jax: 0.10.0
libtpu: 0.0.40
codegen_flags: <defaults>
</compile_context>

<pallas_src>
import functools

import jax
import jax.numpy as jnp
from jax.experimental import pallas as pl
from jax.experimental.pallas import tpu as pltpu


def _gat_kernel(x_ref, adj_ref, w_ref, a_ref, o_ref, *, alpha, nheads, H):
    """All heads of the GAT layer for a single graph (one batch element).

    x_ref   : (1, N, F_in)            VMEM
    adj_ref : (1, N, N)               VMEM   (only tested against 0)
    w_ref   : (F_in, nheads*H)        VMEM   (all heads packed on lanes)
    a_ref   : (nheads*H, 2*nheads)    VMEM   (block-diag [a1 | a2] packing)
    o_ref   : (1, N, nheads*H)        VMEM   (final concatenated layout)
    """
    x = x_ref[0]                                   # (N, F_in)
    adj = adj_ref[0]                               # (N, N)
    w = w_ref[...]                                 # (F_in, nheads*H)
    a = a_ref[...]                                 # (nheads*H, 2*nheads)

    # Fused projection for all heads: one MXU call instead of nheads calls.
    h_all = jnp.dot(x, w, preferred_element_type=jnp.float32)   # (N, nheads*H)

    # Fused attention logits for all heads: one MXU call.
    #   f[:, h]          = h_head_h @ a1_h
    #   f[:, nheads + h] = h_head_h @ a2_h
    f = jnp.dot(h_all, a, preferred_element_type=jnp.float32)   # (N, 2*nheads)
    f1_all = f[:, :nheads]                                       # (N, nheads)
    f2_all_t = f[:, nheads:].T                                   # (nheads, N)

    # Mask computed once, shared across heads.
    adj_zero = adj == 0
    neg_big = jnp.float32(-1000000000.0)

    outs = []
    for hidx in range(nheads):                    # static unrolled loop (small)
        # e_ij = LeakyReLU( (h_i . a1) + (h_j . a2) )
        e = f1_all[:, hidx:hidx + 1] + f2_all_t[hidx:hidx + 1, :]   # (N, N)
        e = jnp.where(e > 0, e, alpha * e)
        # mask where adj == 0 (exactly matches masked_fill semantics),
        # then numerically-stable row softmax
        e = jnp.where(adj_zero, neg_big, e)
        m = jnp.max(e, axis=-1, keepdims=True)
        p = jnp.exp(e - m)
        s = jnp.sum(p, axis=-1, keepdims=True)
        r = pl.reciprocal(s, approx=True)         # EUP path (off the VALU)
        r = r * (2.0 - s * r)                     # one Newton step -> ~f32 exact
        attention = p * r                         # (N, N)

        # h' = attention @ h_head, then ELU (concat=True branch)
        h_h = h_all[:, hidx * H:(hidx + 1) * H]                      # (N, H)
        hp = jnp.dot(attention, h_h, preferred_element_type=jnp.float32)
        outs.append(jnp.where(hp > 0, hp, jnp.exp(hp) - 1.0))

    # Single lane-dense store of the already-concatenated output.
    o_ref[0] = jnp.concatenate(outs, axis=-1).astype(o_ref.dtype)


def _pack_params(w_heads, a1_heads, a2_heads):
    """Pack per-head parameters for the fused kernel (tiny, done once)."""
    nheads, F_in, H = w_heads.shape
    # (nheads, F_in, H) -> (F_in, nheads*H) with head-h columns at [h*H:(h+1)*H]
    w_all = jnp.transpose(w_heads, (1, 0, 2)).reshape(F_in, nheads * H)

    # Block-diagonal packing of a1/a2: (nheads*H, nheads) each.
    eye = jnp.eye(nheads, dtype=w_heads.dtype)                      # (nh, nh)
    a1_bd = (a1_heads[:, :, 0][:, :, None] * eye[:, None, :]).reshape(
        nheads * H, nheads)
    a2_bd = (a2_heads[:, :, 0][:, :, None] * eye[:, None, :]).reshape(
        nheads * H, nheads)
    a_pack = jnp.concatenate([a1_bd, a2_bd], axis=1)                # (nh*H, 2*nh)
    return w_all, a_pack


@functools.partial(jax.jit, static_argnames=("alpha",))
def gat_forward(x, adj, w_heads, a1_heads, a2_heads, *, alpha):
    """Multi-head GAT forward (eval mode).

    x        : (B, N, F_in)
    adj      : (B, N, N)      (only compared against 0; could be int8/bool)
    w_heads  : (nheads, F_in, H)
    a1_heads : (nheads, H, 1)
    a2_heads : (nheads, H, 1)
    returns  : (B, N, nheads * H)   == torch.cat([head_0 .. head_k], dim=2)
    """
    B, N, F_in = x.shape
    nheads, _, H = w_heads.shape

    w_all, a_pack = _pack_params(w_heads, a1_heads, a2_heads)

    kernel = functools.partial(_gat_kernel, alpha=alpha, nheads=nheads, H=H)

    out = pl.pallas_call(
        kernel,
        out_shape=jax.ShapeDtypeStruct((B, N, nheads * H), jnp.float32),
        grid_spec=pltpu.PrefetchScalarGridSpec(
            num_scalar_prefetch=0,
            grid=(B,),
            in_specs=[
                pl.BlockSpec((1, N, F_in), lambda b: (b, 0, 0)),          # x
                pl.BlockSpec((1, N, N), lambda b: (b, 0, 0)),             # adj
                pl.BlockSpec((F_in, nheads * H), lambda b: (0, 0)),       # W_all
                pl.BlockSpec((nheads * H, 2 * nheads), lambda b: (0, 0)),  # a_pack
            ],
            out_specs=pl.BlockSpec((1, N, nheads * H), lambda b: (b, 0, 0)),
        ),
        compiler_params=pltpu.CompilerParams(
            dimension_semantics=("parallel",),
            vmem_limit_bytes=32 * 1024 * 1024,
        ),
    )(x, adj, w_all, a_pack)
    return out


def _xavier_uniform(key, shape, fan_in, fan_out, gain):
    bound = gain * jnp.sqrt(6.0 / (fan_in + fan_out))
    return jax.random.uniform(key, shape, jnp.float32, minval=-bound, maxval=bound)


def _reference_gat(x, adj, w_heads, a1_heads, a2_heads, alpha):
    """Pure-JAX reference of the same forward (eval mode)."""
    outs = []
    for hidx in range(w_heads.shape[0]):
        h = x @ w_heads[hidx]                              # (B, N, H)
        f1 = h @ a1_heads[hidx]                            # (B, N, 1)
        f2 = h @ a2_heads[hidx]                            # (B, N, 1)
        e = f1 + jnp.swapaxes(f2, 1, 2)                    # (B, N, N)
        e = jnp.where(e > 0, e, alpha * e)
        e = jnp.where(adj == 0, -1000000000.0, e)
        att = jax.nn.softmax(e, axis=2)
        hp = att @ h
        outs.append(jnp.where(hp > 0, hp, jnp.exp(hp) - 1.0))
    return jnp.concatenate(outs, axis=2)


if __name__ == "__main__":
    # Small shapes consistent with the module's forward.
    # nheads * nhid = 128 -> lane-dense output slab.
    B, N = 2, 64          # batch of graphs, nodes per graph
    nfeat, nhid = 32, 32  # in_features, out_features per head
    nheads = 4
    alpha = 0.2
    gain = 1.414

    key = jax.random.PRNGKey(0)
    kx, kadj, kw, ka1, ka2 = jax.random.split(key, 5)

    x = jax.random.normal(kx, (B, N, nfeat), jnp.float32)
    # random sparse-ish adjacency with self-loops
    adj = (jax.random.uniform(kadj, (B, N, N)) > 0.5).astype(jnp.float32)
    adj = jnp.maximum(adj, jnp.eye(N, dtype=jnp.float32)[None])

    # Parameters (deterministic xavier-uniform init, matching __init__ shapes).
    # nn.Linear weight is (out, in); we pre-transpose to (in, out) per head.
    w_keys = jax.random.split(kw, nheads)
    a1_keys = jax.random.split(ka1, nheads)
    a2_keys = jax.random.split(ka2, nheads)
    w_heads = jnp.stack([
        _xavier_uniform(w_keys[i], (nhid, nfeat), fan_in=nfeat, fan_out=nhid,
                        gain=gain).T
        for i in range(nheads)
    ])                                                      # (nheads, nfeat, nhid)
    a1_heads = jnp.stack([
        _xavier_uniform(a1_keys[i], (nhid, 1), fan_in=1, fan_out=nhid, gain=gain)
        for i in range(nheads)
    ])                                                      # (nheads, nhid, 1)
    a2_heads = jnp.stack([
        _xavier_uniform(a2_keys[i], (nhid, 1), fan_in=1, fan_out=nhid, gain=gain)
        for i in range(nheads)
    ])                                                      # (nheads, nhid, 1)

    out = gat_forward(x, adj, w_heads, a1_heads, a2_heads, alpha=alpha)
    out = jax.block_until_ready(out)

    ref = _reference_gat(x, adj, w_heads, a1_heads, a2_heads, alpha)
    assert out.shape == (B, N, nheads * nhid), out.shape
    # Slightly relaxed tolerance: EUP approx-reciprocal + Newton step and fused
    # head matmuls reorder f32 rounding vs. the per-head XLA reference.
    assert jnp.allclose(out, ref, atol=2e-4, rtol=2e-4), "mismatch vs JAX reference"

    print("KERNEL_OK")
</pallas_src>

<mosaic_0001>
module attributes {stable_mosaic.version = 11 : i64} {
  func.func @_gat_kernel(%arg0: i32, %arg1: memref<1x64x32xf32, #tpu.memory_space<vmem>>, %arg2: memref<1x64x64xf32, #tpu.memory_space<vmem>>, %arg3: memref<32x128xf32, #tpu.memory_space<vmem>>, %arg4: memref<128x8xf32, #tpu.memory_space<vmem>>, %arg5: memref<1x64x128xf32, #tpu.memory_space<vmem>>) attributes {dimension_semantics = [#tpu.dimension_semantics<parallel>], iteration_bounds = array<i64: 2>, scalar_prefetch = 0 : i64, scratch_operands = 0 : i64, tpu.core_type = #tpu.core_type<tc>, window_params = [{transform_indices = @transform_0, window_bounds = array<i64: 1, 64, 32>}, {transform_indices = @transform_1, window_bounds = array<i64: 1, 64, 64>}, {pipeline_mode = #tpu.pipeline_mode<synchronous>, transform_indices = @transform_2, window_bounds = array<i64: 32, 128>}, {pipeline_mode = #tpu.pipeline_mode<synchronous>, transform_indices = @transform_3, window_bounds = array<i64: 128, 8>}, {transform_indices = @transform_4, window_bounds = array<i64: 1, 64, 128>}]} {
    %c0 = arith.constant 0 : index
    %c0_0 = arith.constant 0 : index
    %c0_1 = arith.constant 0 : index
    %0 = vector.load %arg1[%c0, %c0_0, %c0_1] : memref<1x64x32xf32, #tpu.memory_space<vmem>>, vector<1x64x32xf32>
    %1 = vector.shape_cast %0 : vector<1x64x32xf32> to vector<64x32xf32>
    %c0_2 = arith.constant 0 : index
    %c0_3 = arith.constant 0 : index
    %c0_4 = arith.constant 0 : index
    %2 = vector.load %arg2[%c0_2, %c0_3, %c0_4] : memref<1x64x64xf32, #tpu.memory_space<vmem>>, vector<1x64x64xf32>
    %3 = vector.shape_cast %2 : vector<1x64x64xf32> to vector<64x64xf32>
    %c0_5 = arith.constant 0 : index
    %c0_6 = arith.constant 0 : index
    %4 = vector.load %arg3[%c0_5, %c0_6] : memref<32x128xf32, #tpu.memory_space<vmem>>, vector<32x128xf32>
    %c0_7 = arith.constant 0 : index
    %c0_8 = arith.constant 0 : index
    %5 = vector.load %arg4[%c0_7, %c0_8] : memref<128x8xf32, #tpu.memory_space<vmem>>, vector<128x8xf32>
    %cst = arith.constant dense<0.000000e+00> : vector<64x128xf32>
    %6 = tpu.matmul %1, %4, %cst {dimension_numbers = #tpu.dot_dimension_numbers<[1], [0], [0], [1], [0, 0, 1, 1], [], []>} : vector<64x32xf32>, vector<32x128xf32>, vector<64x128xf32> -> vector<64x128xf32>
    %cst_9 = arith.constant dense<0.000000e+00> : vector<64x8xf32>
    %7 = tpu.matmul %6, %5, %cst_9 {dimension_numbers = #tpu.dot_dimension_numbers<[1], [0], [0], [1], [0, 0, 1, 1], [], []>} : vector<64x128xf32>, vector<128x8xf32>, vector<64x8xf32> -> vector<64x8xf32>
    %8 = vector.extract_strided_slice %7 {offsets = [0, 0], sizes = [64, 4], strides = [1, 1]} : vector<64x8xf32> to vector<64x4xf32>
    %9 = vector.extract_strided_slice %7 {offsets = [0, 4], sizes = [64, 4], strides = [1, 1]} : vector<64x8xf32> to vector<64x4xf32>
    %10 = tpu.transpose %9, [1, 0] : vector<64x4xf32> -> vector<4x64xf32>
    %cst_10 = arith.constant 0.000000e+00 : f32
    %11 = vector.broadcast %cst_10 : f32 to vector<64x64xf32>
    %12 = arith.cmpf oeq, %3, %11 : vector<64x64xf32>
    %13 = vector.extract_strided_slice %8 {offsets = [0, 0], sizes = [64, 1], strides = [1, 1]} : vector<64x4xf32> to vector<64x1xf32>
    %14 = vector.extract_strided_slice %10 {offsets = [0, 0], sizes = [1, 64], strides = [1, 1]} : vector<4x64xf32> to vector<1x64xf32>
    %15 = vector.broadcast %13 : vector<64x1xf32> to vector<64x64xf32>
    %16 = vector.broadcast %14 : vector<1x64xf32> to vector<64x64xf32>
    %17 = arith.addf %15, %16 : vector<64x64xf32>
    %cst_11 = arith.constant 0.000000e+00 : f32
    %18 = vector.broadcast %cst_11 : f32 to vector<64x64xf32>
    %19 = arith.cmpf ogt, %17, %18 : vector<64x64xf32>
    %cst_12 = arith.constant 2.000000e-01 : f32
    %20 = vector.broadcast %cst_12 : f32 to vector<64x64xf32>
    %21 = arith.mulf %20, %17 : vector<64x64xf32>
    %22 = arith.select %19, %17, %21 : vector<64x64xi1>, vector<64x64xf32>
    %cst_13 = arith.constant -1.000000e+09 : f32
    %23 = vector.broadcast %cst_13 : f32 to vector<64x64xf32>
    %24 = arith.select %12, %23, %22 : vector<64x64xi1>, vector<64x64xf32>
    %cst_14 = arith.constant dense<0xFF800000> : vector<64xf32>
    %25 = vector.multi_reduction <maximumf>, %24, %cst_14 [1] : vector<64x64xf32> to vector<64xf32>
    %26 = vector.shape_cast %25 : vector<64xf32> to vector<64x1xf32>
    %27 = vector.broadcast %26 : vector<64x1xf32> to vector<64x64xf32>
    %28 = arith.subf %24, %27 : vector<64x64xf32>
    %29 = math.exp %28 : vector<64x64xf32>
    %cst_15 = arith.constant dense<0.000000e+00> : vector<64xf32>
    %30 = vector.multi_reduction <add>, %29, %cst_15 [1] : vector<64x64xf32> to vector<64xf32>
    %31 = vector.shape_cast %30 : vector<64xf32> to vector<64x1xf32>
    %32 = tpu.reciprocal %31 {approx = true} : vector<64x1xf32> -> vector<64x1xf32>
    %33 = arith.mulf %31, %32 : vector<64x1xf32>
    %cst_16 = arith.constant 2.000000e+00 : f32
    %34 = vector.broadcast %cst_16 : f32 to vector<64x1xf32>
    %35 = arith.subf %34, %33 : vector<64x1xf32>
    %36 = arith.mulf %32, %35 : vector<64x1xf32>
    %37 = vector.broadcast %36 : vector<64x1xf32> to vector<64x64xf32>
    %38 = arith.mulf %29, %37 : vector<64x64xf32>
    %39 = vector.extract_strided_slice %6 {offsets = [0, 0], sizes = [64, 32], strides = [1, 1]} : vector<64x128xf32> to vector<64x32xf32>
    %cst_17 = arith.constant dense<0.000000e+00> : vector<64x32xf32>
    %40 = tpu.matmul %38, %39, %cst_17 {dimension_numbers = #tpu.dot_dimension_numbers<[1], [0], [0], [1], [0, 0, 1, 1], [], []>} : vector<64x64xf32>, vector<64x32xf32>, vector<64x32xf32> -> vector<64x32xf32>
    %cst_18 = arith.constant 0.000000e+00 : f32
    %41 = vector.broadcast %cst_18 : f32 to vector<64x32xf32>
    %42 = arith.cmpf ogt, %40, %41 : vector<64x32xf32>
    %43 = math.exp %40 : vector<64x32xf32>
    %cst_19 = arith.constant 1.000000e+00 : f32
    %44 = vector.broadcast %cst_19 : f32 to vector<64x32xf32>
    %45 = arith.subf %43, %44 : vector<64x32xf32>
    %46 = arith.select %42, %40, %45 : vector<64x32xi1>, vector<64x32xf32>
    %47 = vector.extract_strided_slice %8 {offsets = [0, 1], sizes = [64, 1], strides = [1, 1]} : vector<64x4xf32> to vector<64x1xf32>
    %48 = vector.extract_strided_slice %10 {offsets = [1, 0], sizes = [1, 64], strides = [1, 1]} : vector<4x64xf32> to vector<1x64xf32>
    %49 = vector.broadcast %47 : vector<64x1xf32> to vector<64x64xf32>
    %50 = vector.broadcast %48 : vector<1x64xf32> to vector<64x64xf32>
    %51 = arith.addf %49, %50 : vector<64x64xf32>
    %cst_20 = arith.constant 0.000000e+00 : f32
    %52 = vector.broadcast %cst_20 : f32 to vector<64x64xf32>
    %53 = arith.cmpf ogt, %51, %52 : vector<64x64xf32>
    %cst_21 = arith.constant 2.000000e-01 : f32
    %54 = vector.broadcast %cst_21 : f32 to vector<64x64xf32>
    %55 = arith.mulf %54, %51 : vector<64x64xf32>
    %56 = arith.select %53, %51, %55 : vector<64x64xi1>, vector<64x64xf32>
    %cst_22 = arith.constant -1.000000e+09 : f32
    %57 = vector.broadcast %cst_22 : f32 to vector<64x64xf32>
    %58 = arith.select %12, %57, %56 : vector<64x64xi1>, vector<64x64xf32>
    %cst_23 = arith.constant dense<0xFF800000> : vector<64xf32>
    %59 = vector.multi_reduction <maximumf>, %58, %cst_23 [1] : vector<64x64xf32> to vector<64xf32>
    %60 = vector.shape_cast %59 : vector<64xf32> to vector<64x1xf32>
    %61 = vector.broadcast %60 : vector<64x1xf32> to vector<64x64xf32>
    %62 = arith.subf %58, %61 : vector<64x64xf32>
    %63 = math.exp %62 : vector<64x64xf32>
    %cst_24 = arith.constant dense<0.000000e+00> : vector<64xf32>
    %64 = vector.multi_reduction <add>, %63, %cst_24 [1] : vector<64x64xf32> to vector<64xf32>
    %65 = vector.shape_cast %64 : vector<64xf32> to vector<64x1xf32>
    %66 = tpu.reciprocal %65 {approx = true} : vector<64x1xf32> -> vector<64x1xf32>
    %67 = arith.mulf %65, %66 : vector<64x1xf32>
    %cst_25 = arith.constant 2.000000e+00 : f32
    %68 = vector.broadcast %cst_25 : f32 to vector<64x1xf32>
    %69 = arith.subf %68, %67 : vector<64x1xf32>
    %70 = arith.mulf %66, %69 : vector<64x1xf32>
    %71 = vector.broadcast %70 : vector<64x1xf32> to vector<64x64xf32>
    %72 = arith.mulf %63, %71 : vector<64x64xf32>
    %73 = vector.extract_strided_slice %6 {offsets = [0, 32], sizes = [64, 32], strides = [1, 1]} : vector<64x128xf32> to vector<64x32xf32>
    %cst_26 = arith.constant dense<0.000000e+00> : vector<64x32xf32>
    %74 = tpu.matmul %72, %73, %cst_26 {dimension_numbers = #tpu.dot_dimension_numbers<[1], [0], [0], [1], [0, 0, 1, 1], [], []>} : vector<64x64xf32>, vector<64x32xf32>, vector<64x32xf32> -> vector<64x32xf32>
    %cst_27 = arith.constant 0.000000e+00 : f32
    %75 = vector.broadcast %cst_27 : f32 to vector<64x32xf32>
    %76 = arith.cmpf ogt, %74, %75 : vector<64x32xf32>
    %77 = math.exp %74 : vector<64x32xf32>
    %cst_28 = arith.constant 1.000000e+00 : f32
    %78 = vector.broadcast %cst_28 : f32 to vector<64x32xf32>
    %79 = arith.subf %77, %78 : vector<64x32xf32>
    %80 = arith.select %76, %74, %79 : vector<64x32xi1>, vector<64x32xf32>
    %81 = vector.extract_strided_slice %8 {offsets = [0, 2], sizes = [64, 1], strides = [1, 1]} : vector<64x4xf32> to vector<64x1xf32>
    %82 = vector.extract_strided_slice %10 {offsets = [2, 0], sizes = [1, 64], strides = [1, 1]} : vector<4x64xf32> to vector<1x64xf32>
    %83 = vector.broadcast %81 : vector<64x1xf32> to vector<64x64xf32>
    %84 = vector.broadcast %82 : vector<1x64xf32> to vector<64x64xf32>
    %85 = arith.addf %83, %84 : vector<64x64xf32>
    %cst_29 = arith.constant 0.000000e+00 : f32
    %86 = vector.broadcast %cst_29 : f32 to vector<64x64xf32>
    %87 = arith.cmpf ogt, %85, %86 : vector<64x64xf32>
    %cst_30 = arith.constant 2.000000e-01 : f32
    %88 = vector.broadcast %cst_30 : f32 to vector<64x64xf32>
    %89 = arith.mulf %88, %85 : vector<64x64xf32>
    %90 = arith.select %87, %85, %89 : vector<64x64xi1>, vector<64x64xf32>
    %cst_31 = arith.constant -1.000000e+09 : f32
    %91 = vector.broadcast %cst_31 : f32 to vector<64x64xf32>
    %92 = arith.select %12, %91, %90 : vector<64x64xi1>, vector<64x64xf32>
    %cst_32 = arith.constant dense<0xFF800000> : vector<64xf32>
    %93 = vector.multi_reduction <maximumf>, %92, %cst_32 [1] : vector<64x64xf32> to vector<64xf32>
    %94 = vector.shape_cast %93 : vector<64xf32> to vector<64x1xf32>
    %95 = vector.broadcast %94 : vector<64x1xf32> to vector<64x64xf32>
    %96 = arith.subf %92, %95 : vector<64x64xf32>
    %97 = math.exp %96 : vector<64x64xf32>
    %cst_33 = arith.constant dense<0.000000e+00> : vector<64xf32>
    %98 = vector.multi_reduction <add>, %97, %cst_33 [1] : vector<64x64xf32> to vector<64xf32>
    %99 = vector.shape_cast %98 : vector<64xf32> to vector<64x1xf32>
    %100 = tpu.reciprocal %99 {approx = true} : vector<64x1xf32> -> vector<64x1xf32>
    %101 = arith.mulf %99, %100 : vector<64x1xf32>
    %cst_34 = arith.constant 2.000000e+00 : f32
    %102 = vector.broadcast %cst_34 : f32 to vector<64x1xf32>
    %103 = arith.subf %102, %101 : vector<64x1xf32>
    %104 = arith.mulf %100, %103 : vector<64x1xf32>
    %105 = vector.broadcast %104 : vector<64x1xf32> to vector<64x64xf32>
    %106 = arith.mulf %97, %105 : vector<64x64xf32>
    %107 = vector.extract_strided_slice %6 {offsets = [0, 64], sizes = [64, 32], strides = [1, 1]} : vector<64x128xf32> to vector<64x32xf32>
    %cst_35 = arith.constant dense<0.000000e+00> : vector<64x32xf32>
    %108 = tpu.matmul %106, %107, %cst_35 {dimension_numbers = #tpu.dot_dimension_numbers<[1], [0], [0], [1], [0, 0, 1, 1], [], []>} : vector<64x64xf32>, vector<64x32xf32>, vector<64x32xf32> -> vector<64x32xf32>
    %cst_36 = arith.constant 0.000000e+00 : f32
    %109 = vector.broadcast %cst_36 : f32 to vector<64x32xf32>
    %110 = arith.cmpf ogt, %108, %109 : vector<64x32xf32>
    %111 = math.exp %108 : vector<64x32xf32>
    %cst_37 = arith.constant 1.000000e+00 : f32
    %112 = vector.broadcast %cst_37 : f32 to vector<64x32xf32>
    %113 = arith.subf %111, %112 : vector<64x32xf32>
    %114 = arith.select %110, %108, %113 : vector<64x32xi1>, vector<64x32xf32>
    %115 = vector.extract_strided_slice %8 {offsets = [0, 3], sizes = [64, 1], strides = [1, 1]} : vector<64x4xf32> to vector<64x1xf32>
    %116 = vector.extract_strided_slice %10 {offsets = [3, 0], sizes = [1, 64], strides = [1, 1]} : vector<4x64xf32> to vector<1x64xf32>
    %117 = vector.broadcast %115 : vector<64x1xf32> to vector<64x64xf32>
    %118 = vector.broadcast %116 : vector<1x64xf32> to vector<64x64xf32>
    %119 = arith.addf %117, %118 : vector<64x64xf32>
    %cst_38 = arith.constant 0.000000e+00 : f32
    %120 = vector.broadcast %cst_38 : f32 to vector<64x64xf32>
    %121 = arith.cmpf ogt, %119, %120 : vector<64x64xf32>
    %cst_39 = arith.constant 2.000000e-01 : f32
    %122 = vector.broadcast %cst_39 : f32 to vector<64x64xf32>
    %123 = arith.mulf %122, %119 : vector<64x64xf32>
    %124 = arith.select %121, %119, %123 : vector<64x64xi1>, vector<64x64xf32>
    %cst_40 = arith.constant -1.000000e+09 : f32
    %125 = vector.broadcast %cst_40 : f32 to vector<64x64xf32>
    %126 = arith.select %12, %125, %124 : vector<64x64xi1>, vector<64x64xf32>
    %cst_41 = arith.constant dense<0xFF800000> : vector<64xf32>
    %127 = vector.multi_reduction <maximumf>, %126, %cst_41 [1] : vector<64x64xf32> to vector<64xf32>
    %128 = vector.shape_cast %127 : vector<64xf32> to vector<64x1xf32>
    %129 = vector.broadcast %128 : vector<64x1xf32> to vector<64x64xf32>
    %130 = arith.subf %126, %129 : vector<64x64xf32>
    %131 = math.exp %130 : vector<64x64xf32>
    %cst_42 = arith.constant dense<0.000000e+00> : vector<64xf32>
    %132 = vector.multi_reduction <add>, %131, %cst_42 [1] : vector<64x64xf32> to vector<64xf32>
    %133 = vector.shape_cast %132 : vector<64xf32> to vector<64x1xf32>
    %134 = tpu.reciprocal %133 {approx = true} : vector<64x1xf32> -> vector<64x1xf32>
    %135 = arith.mulf %133, %134 : vector<64x1xf32>
    %cst_43 = arith.constant 2.000000e+00 : f32
    %136 = vector.broadcast %cst_43 : f32 to vector<64x1xf32>
    %137 = arith.subf %136, %135 : vector<64x1xf32>
    %138 = arith.mulf %134, %137 : vector<64x1xf32>
    %139 = vector.broadcast %138 : vector<64x1xf32> to vector<64x64xf32>
    %140 = arith.mulf %131, %139 : vector<64x64xf32>
    %141 = vector.extract_strided_slice %6 {offsets = [0, 96], sizes = [64, 32], strides = [1, 1]} : vector<64x128xf32> to vector<64x32xf32>
    %cst_44 = arith.constant dense<0.000000e+00> : vector<64x32xf32>
    %142 = tpu.matmul %140, %141, %cst_44 {dimension_numbers = #tpu.dot_dimension_numbers<[1], [0], [0], [1], [0, 0, 1, 1], [], []>} : vector<64x64xf32>, vector<64x32xf32>, vector<64x32xf32> -> vector<64x32xf32>
    %cst_45 = arith.constant 0.000000e+00 : f32
    %143 = vector.broadcast %cst_45 : f32 to vector<64x32xf32>
    %144 = arith.cmpf ogt, %142, %143 : vector<64x32xf32>
    %145 = math.exp %142 : vector<64x32xf32>
    %cst_46 = arith.constant 1.000000e+00 : f32
    %146 = vector.broadcast %cst_46 : f32 to vector<64x32xf32>
    %147 = arith.subf %145, %146 : vector<64x32xf32>
    %148 = arith.select %144, %142, %147 : vector<64x32xi1>, vector<64x32xf32>
    %149 = tpu.concatenate %46, %80, %114, %148 in 1 : vector<64x32xf32>, vector<64x32xf32>, vector<64x32xf32>, vector<64x32xf32> -> vector<64x128xf32>
    %c0_47 = arith.constant 0 : index
    %c0_48 = arith.constant 0 : index
    %c0_49 = arith.constant 0 : index
    %150 = vector.load %arg5[%c0_47, %c0_48, %c0_49] : memref<1x64x128xf32, #tpu.memory_space<vmem>>, vector<1x64x128xf32>
    %151 = vector.shape_cast %150 : vector<1x64x128xf32> to vector<64x128xf32>
    %152 = vector.shape_cast %149 : vector<64x128xf32> to vector<1x64x128xf32>
    tpu.vector_store %arg5[%c0_47, %c0_48, %c0_49], %152 {strides = array<i32>} : memref<1x64x128xf32, #tpu.memory_space<vmem>>, vector<1x64x128xf32>,
    return
  }
  func.func @transform_0(%arg0: i32) -> (i32, i32, i32) {
    %c0_i32 = arith.constant 0 : i32
    %c0_i32_0 = arith.constant 0 : i32
    %c0_i32_1 = arith.constant 0 : i32
    return %arg0, %c0_i32, %c0_i32_0 : i32, i32, i32
  }
  func.func @transform_1(%arg0: i32) -> (i32, i32, i32) {
    %c0_i32 = arith.constant 0 : i32
    %c0_i32_0 = arith.constant 0 : i32
    %c0_i32_1 = arith.constant 0 : i32
    return %arg0, %c0_i32, %c0_i32_0 : i32, i32, i32
  }
  func.func @transform_2(%arg0: i32) -> (i32, i32) {
    %c0_i32 = arith.constant 0 : i32
    %c0_i32_0 = arith.constant 0 : i32
    %c0_i32_1 = arith.constant 0 : i32
    return %c0_i32, %c0_i32_0 : i32, i32
  }
  func.func @transform_3(%arg0: i32) -> (i32, i32) {
    %c0_i32 = arith.constant 0 : i32
    %c0_i32_0 = arith.constant 0 : i32
    %c0_i32_1 = arith.constant 0 : i32
    return %c0_i32, %c0_i32_0 : i32, i32
  }
  func.func @transform_4(%arg0: i32) -> (i32, i32, i32) {
    %c0_i32 = arith.constant 0 : i32
    %c0_i32_0 = arith.constant 0 : i32
    %c0_i32_1 = arith.constant 0 : i32
    return %arg0, %c0_i32, %c0_i32_0 : i32, i32, i32
  }
}

</mosaic_0001>

<bundles_post_ra>
// kernel: gat_forward.1
= control target key start
LH: loop header
LB: loop body
LE: loop exit
PB: predicated region body
PF: predicated region fallthrough
CT: control target
= control target key end

     0   :  { %9 = vsyncpa [#allocation3], 0  ;;  %s3463_s0 = inlined_call_operand.vmem [shape: f32[2,64,32], index: 0, kind: input, shape index: {}]   ;;  %s3464_s1 = inlined_call_operand.vmem [shape: f32[2,64,64], index: 1, kind: input, shape index: {}]   ;;  %s3465_s2 = inlined_call_operand.vmem [shape: f32[32,128], index: 2, kind: input, shape index: {}]   ;;  %s3466_s3 = inlined_call_operand.vmem [shape: f32[128,8], index: 3, kind: input, shape index: {}]   ;;  %s3467_s4 = inlined_call_operand.hbm [shape: f32[2,64,128], index: 4, kind: output, shape index: {}]  }
   0x1   :  { %11 = vsyncpa [#allocation3 + $0x1], 0  ;;  %s2432_s15 = smov 0   ;;  %s2434_s16 = smov 0  }
   0x2   :  { %s2436_s17 = smov 0   ;;  %s2438_s18 = smov 0  }
   0x3 LB: > { %s2453_s19 = sadd.s32 4294967295, %s2395_s18   ;;  %s1891_s20 = sadd.s32 4294967294, %s2395_s18   ;;  %s2395_s18 = sphi %s2438_s18, %s3473_s18   ;;  %s2391_s17 = sphi %s2436_s17, %s3472_s17   ;;  %s2387_s16 = sphi %s2434_s16, %s3471_s16   ;;  %s2383_s15 = sphi %s2432_s15, %s3470_s15  }
   0x4   : > { %s2457_s21 = sadd.s32 1, %s2395_s18   ;;  %s118_s22 = sadd.s32 1, %s2391_s17 }
   0x5   : > { %s115_s23 = ssub.s32 %s2395_s18, %s2457_s21  ;;  %p128_p0 = scmp.ne.s32.totalorder %s2391_s17, %s2387_s16 }
   0x6   : > { %p116_p1 = scmp.eq.s32.totalorder %s115_s23, 0  ;;  %p129_p2 = scmp.eq.s32.totalorder %s2453_s19, 1 }
   0x7   : > { %p134_p3 = scmp.ne.s32.totalorder %s2387_s16, %s2383_s15  ;;  %p135_p4 = scmp.eq.s32.totalorder %s1891_s20, 1 }
   0x8   : > { %s2468_s24 = scalar_select %p116_p1, %s2391_s17, %s118_s22  }
   0x9   : > { %p2470_p5 = por %p129_p2, %p128_p0  ;;  %p2474_p6 = por %p135_p4, %p134_p3 }
   0xa   : > { %p1894_p7 = scmp.ge.s32.totalorder %s2395_s18, 1  ;;  %p175_p8 = scmp.lt.s32.totalorder %s2395_s18, 3 }
   0xc   : > { %p176_p9 = pnand %p1894_p7, %p175_p8 }
   0xd   : > { %p206_p10 = scmp.lt.s32.totalorder (!%p176_p9), %s2453_s19, 1  ;;  %s2397_s23 = smov (!%p176_p9), 64  }
   0xe   : > { %179 = sbr.rel (%p176_p9) target bundleno = 1346 (0x542), region = 36  ;;  %s2398_s27 = smov (!%p176_p9), 96  }
   0xf   : > { %s2399_s28 = smov (!%p176_p9), 32   ;;  %s2402_s29 = smov (!%p176_p9), 124  }
  0x10   : > { %s1979_s9 = sshll.u32 (!%p176_p9), %s2453_s19, 6 }
  0x11   : > { %s1813_s14 = scalar_lea.hbm (!%p176_p9), %s3467_s4, %s1979_s9 }
  0x12   : > { %s1816_s20 = sshll.u32 (!%p176_p9), %s1813_s14, 4  ;;  %s1817_s20 = int_to_ptr.hbm [resolvable:$true] %s1816_s20 }
  0x13   : > { %v235_v0 = vld [vmem:[%s3465_s2 + $0x18] sm:$0xff]  ;;  %v234_v1 = vld [vmem:[%s3465_s2 + $0x10] sm:$0xff]  ;;  %v233_v2 = vld [vmem:[%s3465_s2 + $0x8] sm:$0xff]  ;;  %s2491_s7 = scalar_select %p206_p10, %s2453_s19, 1  ;;  %vm252_vm0 = vcmask 261120   ;;  %v2400_v40 = vmov 2  }
  0x14   : > { %289 = vmatpush.msra.mxu0 %v235_v0  ;;  %1980 = vmatpush.msra.mxu1 %v235_v0  ;;  %v232_v3 = vld [vmem:[%s3465_s2] sm:$0xff]  ;;  %v251_v6 = vld [vmem:[%s3466_s3 + $0x78] sm:$0xff]  ;;  %v250_v7 = vld [vmem:[%s3466_s3 + $0x70] sm:$0xff]  ;;  %v2401_v41 = vmov 0   ;;  %v2403_v51 = vmov 3   ;;  %v2404_v56 = vmov 1  }
  0x15   : > { %s1977_s10 = sshll.u32 %s2491_s7, 6  ;;  %v249_v8 = vld [vmem:[%s3466_s3 + $0x68] sm:$0xff]  ;;  %v248_v9 = vld [vmem:[%s3466_s3 + $0x60] sm:$0xff]  ;;  %v247_v12 = vld [vmem:[%s3466_s3 + $0x58] sm:$0xff]  ;;  %2087 = vset.pattern.permute.xlu2 %v2400_v40  ;;  %2089 = vset.pattern.permute.xlu1 %v2401_v41  ;;  %vm504_vm5 = vcmask 523264   ;;  %s203_s7 = sand.u32 1, %s2387_s16  }
  0x16   : > { %290 = vmatpush.msra.mxu0 %v234_v1  ;;  %1981 = vmatpush.msra.mxu1 %v234_v1  ;;  %s2502_s13 = scalar_lea.vmem %s3463_s0, %s1977_s10  ;;  %v246_v13 = vld [vmem:[%s3466_s3 + $0x50] sm:$0xff]  ;;  %v245_v14 = vld [vmem:[%s3466_s3 + $0x48] sm:$0xff]  ;;  %v244_v15 = vld [vmem:[%s3466_s3 + $0x40] sm:$0xff]  ;;  %s2675_s6 = scalar_lea.vmem %s3464_s1, %s1977_s10 }
  0x17   : > { %v216_v4 = vld [vmem:[%s2502_s13] sm:$0xff]  ;;  %v217_v10 = vld [vmem:[%s2502_s13 + $0x8] sm:$0xff]  ;;  %v222_v16 = vld [vmem:[%s2502_s13 + $0x30] sm:$0xff]  ;;  %2085 = vset.pattern.permute.xlu0 %v2401_v41  ;;  %s1895_s10 = sshll.u32 %s203_s7, 6  ;;  %s2347_s22 = sshra.s32 %s1817_s20, 4  ;;  %s2348_s22 = int_to_ptr.hbm [resolvable:$true] %s2347_s22 }
  0x18   : > { %291 = vmatpush.msra.mxu0 %v233_v2  ;;  %1982 = vmatpush.msra.mxu1 %v233_v2  ;;  %v220_v5 = vld [vmem:[%s2502_s13 + $0x20] sm:$0xff]  ;;  %v221_v11 = vld [vmem:[%s2502_s13 + $0x28] sm:$0xff]  ;;  %v218_v17 = vld [vmem:[%s2502_s13 + $0x10] sm:$0xff]  ;;  %s3377_s8 = scalar_lea.vmem [#allocation2], %s1895_s10  ;;  %p2354_p0 = scmp.lt.s32.totalorder %s2348_s22, %s3467_s4 }
  0x19   : > { %v243_v18 = vld [vmem:[%s3466_s3 + $0x38] sm:$0xff]  ;;  %v242_v19 = vld [vmem:[%s3466_s3 + $0x30] sm:$0xff]  ;;  %v241_v20 = vld [vmem:[%s3466_s3 + $0x28] sm:$0xff]  ;;  %s1814_s19 = sshll.u32 %s3377_s8, 4  ;;  %s1815_s19 = int_to_ptr.vmem [resolvable:$true] %s1814_s19 }
  0x1a   : > { %292 = vmatpush.msra.mxu0 %v232_v3  ;;  %1983 = vmatpush.msra.mxu1 %v232_v3  ;;  %v240_v21 = vld [vmem:[%s3466_s3 + $0x20] sm:$0xff]  ;;  %v223_v22 = vld [vmem:[%s2502_s13 + $0x38] sm:$0xff]  ;;  %v238_v25 = vld [vmem:[%s3466_s3 + $0x10] sm:$0xff] }
  0x1b   : > { %1900 = vmatmul.msk.f32.vlgmr.msra.gmra.mxu0 %vm252_vm0, %v216_v4  ;;  %1904 = vmatmul.msk.f32.vlgmr.msra.gmra.mxu1 %vm252_vm0, %v220_v5  ;;  %v219_v23 = vld [vmem:[%s2502_s13 + $0x18] sm:$0xff]  ;;  %v237_v26 = vld [vmem:[%s3466_s3 + $0x8] sm:$0xff]  ;;  %v236_v27 = vld [vmem:[%s3466_s3] sm:$0xff]  ;;  %s1802_s13 = scalar_lea.sflag [#allocation3], %s203_s7 }
  0x1c   : > { %318 = vmatpush.msrb.mxu1 %v251_v6  ;;  %v239_v24 = vld [vmem:[%s3466_s3 + $0x18] sm:$0xff] }
  0x1e   : > { %319 = vmatpush.msrb.mxu1 %v250_v7 }
  0x20   : > { %320 = vmatpush.msrb.mxu1 %v249_v8 }
  0x22   : > { %321 = vmatpush.msrb.mxu1 %v248_v9 }
  0x23   : > { %1901 = vmatmul.msk.f32.gmra.mxu0 %vm252_vm0, %v217_v10  ;;  %1905 = vmatmul.msk.f32.gmra.mxu1 %vm252_vm0, %v221_v11 }
  0x24   : > { %322 = vmatpush.msrb.mxu1 %v247_v12 }
  0x26   : > { %323 = vmatpush.msrb.mxu1 %v246_v13 }
  0x28   : > { %324 = vmatpush.msrb.mxu1 %v245_v14 }
  0x2a   : > { %325 = vmatpush.msrb.mxu1 %v244_v15 }
  0x2b   : > { %1906 = vmatmul.msk.f32.gmra.mxu1 %vm252_vm0, %v222_v16  ;;  %1902 = vmatmul.msk.f32.gmra.mxu0 %vm252_vm0, %v218_v17 }
  0x2c   : > { %326 = vmatpush.msrb.mxu1 %v243_v18 }
  0x2e   : > { %327 = vmatpush.msrb.mxu1 %v242_v19 }
  0x30   : > { %328 = vmatpush.msrb.mxu1 %v241_v20 }
  0x32   : > { %329 = vmatpush.msrb.mxu1 %v240_v21 }
  0x33   : > { %1907 = vmatmul.msk.f32.gmra.mxu1 %vm252_vm0, %v223_v22  ;;  %1903 = vmatmul.msk.f32.gmra.mxu0 %vm252_vm0, %v219_v23 }
  0x34   : > { %330 = vmatpush.msrb.mxu1 %v239_v24 }
  0x36   : > { %331 = vmatpush.msrb.mxu1 %v238_v25 }
  0x38   : > { %332 = vmatpush.msrb.mxu1 %v237_v26 }
  0x3a   : > { %333 = vmatpush.msrb.mxu1 %v236_v27 }
  0x98   : > { %v294_v28 = vpop.f32.mrf.mxu0  ;;  %v306_v29 = vpop.f32.mrf.mxu1 }
  0x99   : > { %334 = vmatmul.f32.vlgmr.msrb.gmra.mxu1 %v294_v28 }
  0xa0   : > { %v297_v30 = vpop.f32.mrf.mxu0  ;;  %v309_v31 = vpop.f32.mrf.mxu1 }
  0xa1   : > { %337 = vmatmul.f32.gmra.mxu1 %v297_v30  ;;  %v2568_v32 = vpack.i.bf16 %v306_v29, %v309_v31  ;;  %v2574_v35 = vpack.i.bf16 %v294_v28, %v297_v30 }
  0xa3   : > { %2056 = vrot.lane.b32.xlu2 %v2568_v32, %s2397_s23  ;;  %2051 = vrot.lane.b32.xlu0 %v2568_v32, %s2398_s27 }
  0xa8   : > { %v312_v33 = vpop.f32.mrf.mxu1  ;;  %v300_v34 = vpop.f32.mrf.mxu0 }
  0xa9   : > { %340 = vmatmul.f32.gmra.mxu1 %v300_v34 }
  0xb0   : > { %v315_v36 = vpop.f32.mrf.mxu1  ;;  %v303_v38 = vpop.f32.mrf.mxu0 }
  0xb1   : > { %649 = vmatpush.msra.mxu2 %v315_v36  ;;  %1984 = vmatpush.msra.mxu3 %v315_v36  ;;  %v2065_v37 = vpack.i.bf16 %v312_v33, %v315_v36  ;;  %v2579_v39 = vpack.i.bf16 %v300_v34, %v303_v38 }
  0xb2   : > { %343 = vmatmul.f32.gmra.mxu1 %v303_v38 }
  0xb3   : > { %2066 = vrot.lane.b32.xlu1 %v2065_v37, %s2397_s23  ;;  %650 = vmatpush.msra.mxu2 %v312_v33 }
  0xb4   : > { %1985 = vmatpush.msra.mxu3 %v312_v33  ;;  %2061 = vrot.lane.b32.xlu2 %v2065_v37, %s2398_s27 }
  0xb5   : > { %651 = vmatpush.msra.mxu2 %v309_v31  ;;  %2081 = vrot.lane.b32.xlu0 %v2065_v37, %s2399_s28 }
  0xb6   : > { %1986 = vmatpush.msra.mxu3 %v309_v31 }
  0xb7   : > { %652 = vmatpush.msra.mxu2 %v306_v29 }
  0xb8   : > { %1987 = vmatpush.msra.mxu3 %v306_v29 }
  0xb9   : > { %653 = vmatpush.msra.mxu2 %v303_v38 }
  0xba   : > { %1988 = vmatpush.msra.mxu3 %v303_v38  ;;  %346 = vmatmul.f32.gmra.mxu1 %v306_v29 }
  0xbb   : > { %2071 = vrot.lane.b32.xlu1 %v2579_v39, %s2398_s27  ;;  %654 = vmatpush.msra.mxu2 %v300_v34 }
  0xbc   : > { %1989 = vmatpush.msra.mxu3 %v300_v34  ;;  %2076 = vrot.lane.b32.xlu2 %v2579_v39, %s2397_s23 }
  0xbd   : > { %655 = vmatpush.msra.mxu2 %v297_v30 }
  0xbe   : > { %1990 = vmatpush.msra.mxu3 %v297_v30 }
  0xbf   : > { %656 = vmatpush.msra.mxu2 %v294_v28 }
  0xc0   : > { %1991 = vmatpush.msra.mxu3 %v294_v28 }
  0xc2   : > { %349 = vmatmul.f32.gmra.mxu1 %v309_v31 }
  0xca   : > { %352 = vmatmul.f32.gmra.mxu1 %v312_v33 }
  0xd2   : > { %355 = vmatmul.f32.gmra.mxu1 %v315_v36 }
  0xfd   : > { %v2057_v42 = vpop.permute.xlu2 %2056 }
  0xfe   : > { %v2058_v57 = vunpack.i.l.bf16 %v2057_v42  ;;  %v2059_v58 = vunpack.i.h.bf16 %v2057_v42 }
 0x10e   : > { %v2062_v43 = vpop.permute.xlu2 %2061 }
 0x10f   : > { %v2063_v44 = vunpack.i.l.bf16 %v2062_v43  ;;  %v2064_v45 = vunpack.i.h.bf16 %v2062_v43 }
 0x111   : > { %971 = vmatpush.msrb.mxu3 %v2063_v44 }
 0x113   : > { %972 = vmatpush.msrb.mxu3 %v2064_v45 }
 0x115   : > { %v2052_v46 = vpop.permute.xlu0 %2051 }
 0x116   : > { %v335_v47 = vpop.f32.mrf.mxu1  ;;  %v2053_v48 = vunpack.i.l.bf16 %v2052_v46  ;;  %v2054_v49 = vunpack.i.h.bf16 %v2052_v46  ;;  %v2077_v59 = vpop.permute.xlu2 %2076 }
 0x117   : > { %367 = vrot.lane.b32.xlu0 %v335_v47, %s2402_s29  ;;  %1045 = vperm.xlu2 %2087, %v335_v47   ;;  %v2078_v61 = vunpack.i.l.bf16 %v2077_v59  ;;  %v2079_v1 = vunpack.i.h.bf16 %v2077_v59 }
 0x118   : > { %973 = vmatpush.msrb.mxu3 %v2053_v48 }
 0x11a   : > { %974 = vmatpush.msrb.mxu3 %v2054_v49  ;;  %v2685_v49 = vld [vmem:[%s2675_s6 + $0x8] sm:$0xff] }
 0x11b   : > { %vm424_vm1 = vcmp.eq.f32.partialorder %v2685_v49, 0.0 }
 0x11e   : > { %v338_v50 = vpop.f32.mrf.mxu1 }
 0x11f   : > { %432 = vperm.xlu0 %2085, %v335_v47   ;;  %2088 = vset.pattern.permute.xlu2 %v2403_v51 }
 0x120   : > { %436 = vperm.xlu1 %2089, %v338_v50   ;;  %1359 = vperm.xlu2 %2088, %v335_v47  }
 0x125   : > { %v2067_v52 = vpop.permute.xlu1 %2066 }
 0x126   : > { %v2068_v53 = vunpack.i.l.bf16 %v2067_v52  ;;  %v2069_v54 = vunpack.i.h.bf16 %v2067_v52  ;;  %v341_v55 = vpop.f32.mrf.mxu1 }
 0x127   : > { %2086 = vset.pattern.permute.xlu0 %v2404_v56  ;;  %v2606_v4 = vpop.permute.xlu0 %2081 }
 0x128   : > { %2090 = vset.pattern.permute.xlu1 %v2404_v56  ;;  %1285 = vmatpush.msrb.mxu0 %v2068_v53  ;;  %v2083_v5 = vunpack.i.l.bf16 %v2606_v4  ;;  %v2084_v6 = vunpack.i.h.bf16 %v2606_v4  ;;  %v2693_v53 = vld [vmem:[%s2675_s6 + $0x28] sm:$0xff] }
 0x129   : > { %723 = vperm.xlu0 %2086, %v335_v47   ;;  %727 = vperm.xlu1 %2090, %v338_v50   ;;  %vm428_vm6 = vcmp.eq.f32.partialorder %v2693_v53, 0.0 }
 0x12a   : > { %1286 = vmatpush.msrb.mxu0 %v2069_v54  ;;  %2095 = vset.pattern.permute.xlu2 %v2400_v40 }
 0x12b   : > { %1053 = vperm.xlu2 %2095, %v341_v55   ;;  %1992 = vmatpush.msrb.mxu2 %v2083_v5 }
 0x12c   : > { %1287 = vmatpush.msrb.mxu0 %v2058_v57 }
 0x12d   : > { %v2072_v60 = vpop.permute.xlu1 %2071  ;;  %1993 = vmatpush.msrb.mxu2 %v2084_v6 }
 0x12e   : > { %1288 = vmatpush.msrb.mxu0 %v2059_v58  ;;  %v2073_v62 = vunpack.i.l.bf16 %v2072_v60  ;;  %v2074_v63 = vunpack.i.h.bf16 %v2072_v60 }
 0x12f   : > { %v344_v0 = vpop.f32.mrf.mxu1 }
 0x130   : > { %1289 = vmatpush.msrb.mxu0 %v2078_v61  ;;  %975 = vmatpush.msrb.mxu3 %v2073_v62 }
 0x131   : > { %369 = vrot.lane.b32.xlu0 %v338_v50, %s2402_s29  ;;  %2092 = vset.pattern.permute.xlu1 %v2403_v51 }
 0x132   : > { %1363 = vperm.xlu1 %2092, %v338_v50   ;;  %976 = vmatpush.msrb.mxu3 %v2074_v63  ;;  %v2705_v63 = vld [vmem:[%s2675_s6 + $0x18] sm:$0xff] }
 0x133   : > { %1290 = vmatpush.msrb.mxu0 %v2079_v1  ;;  %2091 = vset.pattern.permute.xlu0 %v2400_v40  ;;  %v2708_v1 = vld [vmem:[%s2675_s6 + $0x10] sm:$0xff]  ;;  %vm426_vm10 = vcmp.eq.f32.partialorder %v2705_v63, 0.0 }
 0x134   : > { %1057 = vperm.xlu2 %2095, %v344_v0   ;;  %vm425_vm11 = vcmp.eq.f32.partialorder %v2708_v1, 0.0 }
 0x137   : > { %v347_v2 = vpop.f32.mrf.mxu1 }
 0x139   : > { %1049 = vperm.xlu0 %2091, %v338_v50   ;;  %v2688_v50 = vld [vmem:[%s2675_s6] sm:$0xff] }
 0x13a   : > { %371 = vrot.lane.b32.xlu1 %v341_v55, %s2402_s29  ;;  %vm423_vm2 = vcmp.eq.f32.partialorder %v2688_v50, 0.0 }
 0x13b   : > { %2093 = vset.pattern.permute.xlu1 %v2401_v41 }
 0x13c   : > { %375 = vrot.lane.b32.xlu2 %v347_v2, %s2402_s29 }
 0x13f   : > { %v350_v3 = vpop.f32.mrf.mxu1 }
 0x141   : > { %2097 = vset.pattern.permute.xlu0 %v2401_v41 }
 0x142   : > { %440 = vperm.xlu1 %2093, %v341_v55   ;;  %444 = vperm.xlu0 %2097, %v344_v0  }
 0x144   : > { %1061 = vperm.xlu2 %2095, %v347_v2  }
 0x147   : > { %v353_v7 = vpop.f32.mrf.mxu1 }
 0x14a   : > { %2094 = vset.pattern.permute.xlu1 %v2404_v56  ;;  %2101 = vset.pattern.permute.xlu0 %v2404_v56 }
 0x14b   : > { %731 = vperm.xlu1 %2094, %v341_v55   ;;  %739 = vperm.xlu0 %2101, %v347_v2  }
 0x14c   : > { %377 = vrot.lane.b32.xlu2 %v350_v3, %s2402_s29 }
 0x14d   : > { %2106 = vset.pattern.permute.xlu2 %v2403_v51 }
 0x14f   : > { %v356_v8 = vpop.f32.mrf.mxu1 }
 0x153   : > { %2096 = vset.pattern.permute.xlu1 %v2403_v51  ;;  %2102 = vset.pattern.permute.xlu0 %v2403_v51 }
 0x154   : > { %1367 = vperm.xlu1 %2096, %v341_v55   ;;  %1375 = vperm.xlu0 %2102, %v347_v2  }
 0x155   : > { %1379 = vperm.xlu2 %2106, %v350_v3  }
 0x15c   : > { %373 = vrot.lane.b32.xlu1 %v344_v0, %s2402_s29  ;;  %2103 = vset.pattern.permute.xlu0 %v2401_v41 }
 0x15d   : > { %452 = vperm.xlu0 %2103, %v350_v3   ;;  %2098 = vset.pattern.permute.xlu1 %v2404_v56 }
 0x15e   : > { %2109 = vset.pattern.permute.xlu2 %v2400_v40 }
 0x15f   : > { %1069 = vperm.xlu2 %2109, %v353_v7  }
 0x164   : > { %735 = vperm.xlu1 %2098, %v344_v0  }
 0x165   : > { %379 = vrot.lane.b32.xlu0 %v353_v7, %s2402_s29 }
 0x166   : > { %2108 = vset.pattern.permute.xlu0 %v2404_v56 }
 0x16c   : > { %2099 = vset.pattern.permute.xlu1 %v2403_v51 }
 0x16d   : > { %1371 = vperm.xlu1 %2099, %v344_v0   ;;  %747 = vperm.xlu0 %2108, %v353_v7  }
 0x171   : > { %v2637_v16 = vpop.permute.xlu2 %1045 }
 0x175   : > { %2100 = vset.pattern.permute.xlu1 %v2401_v41  ;;  %2110 = vset.pattern.permute.xlu0 %v2403_v51 }
 0x176   : > { %448 = vperm.xlu1 %2100, %v347_v2   ;;  %1383 = vperm.xlu0 %2110, %v353_v7  }
 0x17a   : > { %v2640_v18 = vpop.permute.xlu2 %1359 }
 0x17e   : > { %2104 = vset.pattern.permute.xlu1 %v2404_v56  ;;  %2111 = vset.pattern.permute.xlu0 %v2401_v41 }
 0x17f   : > { %743 = vperm.xlu1 %2104, %v350_v3   ;;  %460 = vperm.xlu0 %2111, %v356_v8  }
 0x185   : > { %v2644_v21 = vpop.permute.xlu2 %1053 }
 0x187   : > { %2105 = vset.pattern.permute.xlu1 %v2400_v40  ;;  %2113 = vset.pattern.permute.xlu0 %v2400_v40 }
 0x188   : > { %1065 = vperm.xlu1 %2105, %v350_v3   ;;  %1073 = vperm.xlu0 %2113, %v356_v8  }
 0x189   : > { %v368_v9 = vpop.permute.xlu0 %367 }
 0x18a   : > { %391 = vxpose.xlu2.b32.start [1/8] (short) (narrow) %v368_v9, 8 }
 0x18e   : > { %v2648_v24 = vpop.permute.xlu2 %1057 }
 0x190   : > { %2107 = vset.pattern.permute.xlu1 %v2401_v41  ;;  %2140 = vset.pattern.permute.xlu0 %v2403_v51 }
 0x191   : > { %456 = vperm.xlu1 %2107, %v353_v7   ;;  %v433_v10 = vpop.permute.xlu0 %432 }
 0x192   : > { %v437_v11 = vpop.permute.xlu1 %436 }
 0x196   : > { %v376_v27 = vpop.permute.xlu2 %375 }
 0x199   : > { %381 = vrot.lane.b32.xlu1 %v356_v8, %s2402_s29  ;;  %s2353_s29 = scalar_lea.hbm %s3467_s4, 128 }
 0x19a   : > { %2112 = vset.pattern.permute.xlu1 %v2404_v56 }
 0x19b   : > { %v2631_v12 = vpop.permute.xlu0 %723  ;;  %v2633_v13 = vpop.permute.xlu1 %727 }
 0x19e   : > { %v2656_v30 = vpop.permute.xlu2 %1061 }
 0x1a1   : > { %751 = vperm.xlu1 %2112, %v356_v8  }
 0x1a3   : > { %v370_v14 = vpop.permute.xlu0 %369 }
 0x1a4   : > { %v2635_v15 = vpop.permute.xlu1 %1363  ;;  %392 = vxpose.xlu2.b32.cont [2/8] (short) (narrow) %v370_v14, 8 }
 0x1a6   : > { %v378_v34 = vpop.permute.xlu2 %377 }
 0x1a9   : > { %2114 = vset.pattern.permute.xlu1 %v2403_v51 }
 0x1aa   : > { %1387 = vperm.xlu1 %2114, %v356_v8  }
 0x1ab   : > { %v2642_v20 = vpop.permute.xlu0 %1049 }
 0x1ac   : > { %v372_v17 = vpop.permute.xlu1 %371 }
 0x1ad   : > { %393 = vxpose.xlu2.b32.cont [3/8] (short) (narrow) %v372_v17, 8 }
 0x1af   : > { %v2666_v44 = vpop.permute.xlu2 %1379 }
 0x1b4   : > { %v441_v19 = vpop.permute.xlu1 %440  ;;  %v445_v23 = vpop.permute.xlu0 %444 }
 0x1b9   : > { %v2668_v45 = vpop.permute.xlu2 %1069 }
 0x1bd   : > { %v2646_v22 = vpop.permute.xlu1 %731  ;;  %v2652_v26 = vpop.permute.xlu0 %739 }
 0x1c6   : > { %v2650_v25 = vpop.permute.xlu1 %1367  ;;  %v2654_v29 = vpop.permute.xlu0 %1375 }
 0x1ce   : > { %v374_v28 = vpop.permute.xlu1 %373 }
 0x1cf   : > { %394 = vxpose.xlu2.b32.cont [4/8] (short) (narrow) %v374_v28, 8  ;;  %v453_v33 = vpop.permute.xlu0 %452 }
 0x1d6   : > { %v2658_v31 = vpop.permute.xlu1 %735 }
 0x1d7   : > { %395 = vxpose.xlu2.b32.cont [5/8] (short) (narrow) %v376_v27, 8  ;;  %v380_v37 = vpop.permute.xlu0 %379 }
 0x1df   : > { %v2660_v36 = vpop.permute.xlu1 %1371  ;;  %396 = vxpose.xlu2.b32.cont [6/8] (short) (narrow) %v378_v34, 8  ;;  %v2677_v46 = vpop.permute.xlu0 %747 }
 0x1e7   : > { %397 = vxpose.xlu2.b32.cont [7/8] (short) (narrow) %v380_v37, 8  ;;  %v2743_v37 = vld [vmem:[%s2675_s6 + $0x30] sm:$0xff] }
 0x1e8   : > { %v449_v38 = vpop.permute.xlu1 %448  ;;  %v2710_v3 = vpop.permute.xlu0 %1383  ;;  %vm429_vm15 = vcmp.eq.f32.partialorder %v2743_v37, 0.0 }
 0x1f1   : > { %v2662_v40 = vpop.permute.xlu1 %743 }
 0x1fa   : > { %v2664_v41 = vpop.permute.xlu1 %1065 }
 0x203   : > { %v457_v42 = vpop.permute.xlu1 %456 }
 0x20b   : > { %v382_v43 = vpop.permute.xlu1 %381 }
 0x20c   : > { %398 = vxpose.xlu2.b32.end [8/8] (short) (narrow) %v382_v43, 8  ;;  %v2748_v43 = vld [vmem:[%s2675_s6 + $0x20] sm:$0xff] }
 0x26d   : > { %v2679_v47 = vpop.trf.xlu2 }
 0x26e   : > { %v2682_v48 = vperm.slane %v2679_v47, 0  ;;  %v2698_v56 = vperm.slane %v2679_v47, 1 }
 0x270   : > { %v465_v51 = vadd.f32 %v2682_v48, %v437_v11  ;;  %v464_v52 = vadd.f32 %v2682_v48, %v433_v10  ;;  %v469_v54 = vadd.f32 %v2682_v48, %v453_v33  ;;  %v467_v55 = vadd.f32 %v2682_v48, %v445_v23 }
 0x271   : > { %v466_v57 = vadd.f32 %v2682_v48, %v441_v19  ;;  %v757_v14 = vadd.f32 %v2698_v56, %v2646_v22  ;;  %v470_v23 = vadd.f32 %v2682_v48, %v457_v42  ;;  %v468_v27 = vadd.f32 %v2682_v48, %v449_v38 }
 0x272   : > { %vm473_vm3 = vcmp.gt.f32.partialorder %v465_v51, 0.0  ;;  %v481_v58 = vmul.f32 0.2, %v465_v51  ;;  %vm472_vm4 = vcmp.gt.f32.partialorder %v464_v52, 0.0  ;;  %v480_v59 = vmul.f32 0.2, %v464_v52 }
 0x273   : > { %vm477_vm7 = vcmp.gt.f32.partialorder %v469_v54, 0.0  ;;  %v485_v60 = vmul.f32 0.2, %v469_v54  ;;  %v483_v0 = vmul.f32 0.2, %v467_v55  ;;  %vm475_vm8 = vcmp.gt.f32.partialorder %v467_v55, 0.0 }
 0x274   : > { %v489_v61 = vsel %vm473_vm3, %v465_v51, %v481_v58  ;;  %v488_v62 = vsel %vm472_vm4, %v464_v52, %v480_v59  ;;  %v482_v2 = vmul.f32 0.2, %v466_v57  ;;  %vm474_vm9 = vcmp.gt.f32.partialorder %v466_v57, 0.0  ;;  %v461_v58 = vpop.permute.xlu0 %460 }
 0x275   : > { %v2714_v7 = vsel %vm424_vm1, -1e+09, %v489_v61  ;;  %v2718_v8 = vsel %vm423_vm2, -1e+09, %v488_v62  ;;  %v493_v11 = vsel %vm477_vm7, %v469_v54, %v485_v60  ;;  %v491_v17 = vsel %vm475_vm8, %v467_v55, %v483_v0 }
 0x276   : > { %v508_v9 = vsel %vm504_vm5, %v2714_v7, -inf  ;;  %v505_v10 = vsel %vm504_vm5, %v2718_v8, -inf  ;;  %v490_v19 = vsel %vm474_vm9, %v466_v57, %v482_v2  ;;  %v2732_v28 = vsel %vm428_vm6, -1e+09, %v493_v11  ;;  %v2776_v11 = vld [vmem:[%s2675_s6 + $0x38] sm:$0xff] }
 0x277   : > { %509 = vmax.xlane.f32.xlu0 %v508_v9  ;;  %506 = vmax.xlane.f32.xlu1 %v505_v10  ;;  %v773_v33 = vmul.f32 0.2, %v757_v14  ;;  %v2736_v22 = vsel %vm426_vm10, -1e+09, %v491_v17  ;;  %v2740_v34 = vsel %vm425_vm11, -1e+09, %v490_v19  ;;  %v758_v57 = vadd.f32 %v2698_v56, %v2658_v31 }
 0x278   : > { %vm765_vm12 = vcmp.gt.f32.partialorder %v757_v14, 0.0  ;;  %v520_v42 = vsel %vm504_vm5, %v2732_v28, -inf  ;;  %v486_v38 = vmul.f32 0.2, %v470_v23  ;;  %v484_v51 = vmul.f32 0.2, %v468_v27 }
 0x279   : > { %vm478_vm13 = vcmp.gt.f32.partialorder %v470_v23, 0.0  ;;  %vm476_vm14 = vcmp.gt.f32.partialorder %v468_v27, 0.0  ;;  %v514_v52 = vsel %vm504_vm5, %v2736_v22, -inf  ;;  %v511_v54 = vsel %vm504_vm5, %v2740_v34, -inf }
 0x27a   : > { %v781_v55 = vsel %vm765_vm12, %v757_v14, %v773_v33  ;;  %vm427_vm3 = vcmp.eq.f32.partialorder %v2748_v43, 0.0  ;;  %v494_v59 = vsel %vm478_vm13, %v470_v23, %v486_v38  ;;  %v492_v60 = vsel %vm476_vm14, %v468_v27, %v484_v51 }
 0x27b   : > { %v755_v61 = vadd.f32 %v2698_v56, %v2631_v12  ;;  %v471_v62 = vadd.f32 %v2682_v48, %v461_v58  ;;  %v2763_v0 = vsel %vm425_vm11, -1e+09, %v781_v55  ;;  %v774_v31 = vmul.f32 0.2, %v758_v57 }
 0x27c   : > { %v2767_v2 = vsel %vm429_vm15, -1e+09, %v494_v59  ;;  %v2771_v9 = vsel %vm427_vm3, -1e+09, %v492_v60  ;;  %vm766_vm4 = vcmp.gt.f32.partialorder %v758_v57, 0.0  ;;  %v801_v10 = vsel %vm504_vm5, %v2763_v0, -inf }
 0x27d   : > { %521 = vmax.xlane.f32.xlu2 %v520_v42  ;;  %v771_v12 = vmul.f32 0.2, %v755_v61  ;;  %v487_v48 = vmul.f32 0.2, %v471_v62  ;;  %vm763_vm7 = vcmp.gt.f32.partialorder %v755_v61, 0.0  ;;  %vm479_vm8 = vcmp.gt.f32.partialorder %v471_v62, 0.0 }
 0x27e   : > { %v523_v14 = vsel %vm504_vm5, %v2767_v2, -inf  ;;  %v517_v17 = vsel %vm504_vm5, %v2771_v9, -inf  ;;  %v782_v19 = vsel %vm766_vm4, %v758_v57, %v774_v31  ;;  %v759_v23 = vadd.f32 %v2698_v56, %v2652_v26 }
 0x27f   : > { %515 = vmax.xlane.f32.xlu0 %v514_v52  ;;  %512 = vmax.xlane.f32.xlu1 %v511_v54  ;;  %vm430_vm9 = vcmp.eq.f32.partialorder %v2776_v11, 0.0  ;;  %v779_v27 = vsel %vm763_vm7, %v755_v61, %v771_v12  ;;  %v495_v33 = vsel %vm479_vm8, %v471_v62, %v487_v48  ;;  %v761_v42 = vadd.f32 %v2698_v56, %v2677_v46  ;;  %v752_v62 = vpop.permute.xlu1 %751 }
 0x280   : > { %v756_v38 = vadd.f32 %v2698_v56, %v2633_v13  ;;  %v2791_v51 = vsel %vm426_vm10, -1e+09, %v782_v19  ;;  %v775_v52 = vmul.f32 0.2, %v759_v23  ;;  %v2795_v26 = vsel %vm423_vm2, -1e+09, %v779_v27 }
 0x281   : > { %v2799_v54 = vsel %vm430_vm9, -1e+09, %v495_v33  ;;  %vm767_vm12 = vcmp.gt.f32.partialorder %v759_v23, 0.0  ;;  %v2802_v55 = vperm.slane %v2679_v47, 3  ;;  %v804_v13 = vsel %vm504_vm5, %v2791_v51, -inf }
 0x282   : > { %v777_v46 = vmul.f32 0.2, %v761_v42  ;;  %v772_v57 = vmul.f32 0.2, %v756_v38  ;;  %vm769_vm13 = vcmp.gt.f32.partialorder %v761_v42, 0.0  ;;  %vm764_vm14 = vcmp.gt.f32.partialorder %v756_v38, 0.0 }
 0x283   : > { %v795_v58 = vsel %vm504_vm5, %v2795_v26, -inf  ;;  %v526_v59 = vsel %vm504_vm5, %v2799_v54, -inf  ;;  %v783_v60 = vsel %vm767_vm12, %v759_v23, %v775_v52  ;;  %v760_v61 = vadd.f32 %v2698_v56, %v2662_v40 }
 0x284   : > { %v2813_v31 = vperm.slane %v2679_v47, 2  ;;  %v780_v12 = vsel %vm764_vm14, %v756_v38, %v772_v57  ;;  %v1392_v48 = vadd.f32 %v2802_v55, %v2635_v15 }
 0x285   : > { %802 = vmax.xlane.f32.xlu2 %v801_v10  ;;  %v785_v10 = vsel %vm769_vm13, %v761_v42, %v777_v46  ;;  %v776_v19 = vmul.f32 0.2, %v760_v61  ;;  %v2828_v47 = vsel %vm424_vm1, -1e+09, %v780_v12  ;;  %vm768_vm4 = vcmp.gt.f32.partialorder %v760_v61, 0.0 }
 0x286   : > { %v2824_v40 = vsel %vm429_vm15, -1e+09, %v785_v10  ;;  %v1083_v23 = vadd.f32 %v2813_v31, %v2668_v45  ;;  %vm1400_vm7 = vcmp.gt.f32.partialorder %v1392_v48, 0.0  ;;  %v798_v38 = vsel %vm504_vm5, %v2828_v47, -inf }
 0x287   : > { %524 = vmax.xlane.f32.xlu0 %v523_v14  ;;  %518 = vmax.xlane.f32.xlu1 %v517_v17  ;;  %v762_v14 = vadd.f32 %v2698_v56, %v752_v62  ;;  %v2820_v17 = vsel %vm427_vm3, -1e+09, %v783_v60  ;;  %v1408_v56 = vmul.f32 0.2, %v1392_v48  ;;  %v813_v42 = vsel %vm504_vm5, %v2824_v40, -inf }
 0x288   : > { %v807_v15 = vsel %vm504_vm5, %v2820_v17, -inf  ;;  %vm1091_vm12 = vcmp.gt.f32.partialorder %v1083_v23, 0.0  ;;  %v1099_v33 = vmul.f32 0.2, %v1083_v23  ;;  %v784_v52 = vsel %vm768_vm4, %v760_v61, %v776_v19 }
 0x289   : > { %v778_v27 = vmul.f32 0.2, %v762_v14  ;;  %vm770_vm8 = vcmp.gt.f32.partialorder %v762_v14, 0.0  ;;  %v1078_v45 = vadd.f32 %v2813_v31, %v2642_v20  ;;  %v1416_v57 = vsel %vm1400_vm7, %v1392_v48, %v1408_v56 }
 0x28a   : > { %v1107_v46 = vsel %vm1091_vm12, %v1083_v23, %v1099_v33  ;;  %v2850_v61 = vsel %vm428_vm6, -1e+09, %v784_v52  ;;  %v2854_v62 = vsel %vm424_vm1, -1e+09, %v1416_v57  ;;  %v1079_v23 = vadd.f32 %v2813_v31, %v2644_v21 }
 0x28b   : > { %v2846_v60 = vsel %vm429_vm15, -1e+09, %v1107_v46  ;;  %v1094_v20 = vmul.f32 0.2, %v1078_v45  ;;  %vm1086_vm13 = vcmp.gt.f32.partialorder %v1078_v45, 0.0  ;;  %v1434_v48 = vsel %vm504_vm5, %v2854_v62, -inf }
 0x28c   : > { %v1393_v33 = vadd.f32 %v2802_v55, %v2650_v25  ;;  %vm1087_vm7 = vcmp.gt.f32.partialorder %v1079_v23, 0.0  ;;  %v1081_v57 = vadd.f32 %v2813_v31, %v2656_v30 }
 0x28d   : > { %805 = vmax.xlane.f32.xlu2 %v804_v13  ;;  %v1080_v13 = vadd.f32 %v2813_v31, %v2648_v24  ;;  %v1102_v19 = vsel %vm1086_vm13, %v1078_v45, %v1094_v20  ;;  %v1395_v20 = vadd.f32 %v2802_v55, %v2654_v29 }
 0x28e   : > { %vm1401_vm12 = vcmp.gt.f32.partialorder %v1393_v33, 0.0 }
 0x28f   : > { %796 = vmax.xlane.f32.xlu0 %v795_v58  ;;  %527 = vmax.xlane.f32.xlu1 %v526_v59  ;;  %v786_v58 = vsel %vm770_vm8, %v762_v14, %v778_v27  ;;  %v1077_v59 = vadd.f32 %v2813_v31, %v2637_v16  ;;  %v810_v16 = vsel %vm504_vm5, %v2850_v61, -inf  ;;  %v1096_v10 = vmul.f32 0.2, %v1080_v13 }
 0x290   : > { %v2858_v24 = vsel %vm430_vm9, -1e+09, %v786_v58  ;;  %vm1088_vm14 = vcmp.gt.f32.partialorder %v1080_v13, 0.0  ;;  %v1394_v27 = vadd.f32 %v2802_v55, %v2660_v36  ;;  %vm1403_vm13 = vcmp.gt.f32.partialorder %v1395_v20, 0.0 }
 0x291   : > { %v1093_v12 = vmul.f32 0.2, %v1077_v59  ;;  %vm1085_vm4 = vcmp.gt.f32.partialorder %v1077_v59, 0.0  ;;  %v816_v14 = vsel %vm504_vm5, %v2858_v24, -inf }
 0x292   : > { %v1410_v45 = vmul.f32 0.2, %v1394_v27  ;;  %vm1402_vm8 = vcmp.gt.f32.partialorder %v1394_v27, 0.0 }
 0x293   : > { %v1101_v56 = vsel %vm1085_vm4, %v1077_v59, %v1093_v12 }
 0x294   : > { %v2882_v21 = vsel %vm423_vm2, -1e+09, %v1101_v56  ;;  %v1418_v58 = vsel %vm1402_vm8, %v1394_v27, %v1410_v45 }
 0x295   : > { %808 = vmax.xlane.f32.xlu2 %v807_v15  ;;  %v1104_v15 = vsel %vm1088_vm14, %v1080_v13, %v1096_v10  ;;  %v1409_v13 = vmul.f32 0.2, %v1393_v33  ;;  %v1117_v49 = vsel %vm504_vm5, %v2882_v21, -inf  ;;  %v1097_v10 = vmul.f32 0.2, %v1081_v57 }
 0x296   : > { %v2878_v52 = vsel %vm426_vm10, -1e+09, %v1104_v15  ;;  %v2900_v12 = vsel %vm426_vm10, -1e+09, %v1418_v58  ;;  %v1082_v15 = vadd.f32 %v2813_v31, %v2664_v41 }
 0x297   : > { %814 = vmax.xlane.f32.xlu0 %v813_v42  ;;  %799 = vmax.xlane.f32.xlu1 %v798_v38  ;;  %v2874_v42 = vsel %vm424_vm1, -1e+09, %v1102_v19  ;;  %v1095_v38 = vmul.f32 0.2, %v1079_v23  ;;  %v1126_v25 = vsel %vm504_vm5, %v2878_v52, -inf  ;;  %v1417_v59 = vsel %vm1401_vm12, %v1393_v33, %v1409_v13 }
 0x298   : > { %v1120_v36 = vsel %vm504_vm5, %v2874_v42, -inf  ;;  %vm1089_vm1 = vcmp.gt.f32.partialorder %v1081_v57, 0.0  ;;  %v1440_v29 = vsel %vm504_vm5, %v2900_v12, -inf  ;;  %vm1090_vm10 = vcmp.gt.f32.partialorder %v1082_v15, 0.0 }
 0x299   : > { %v1103_v46 = vsel %vm1087_vm7, %v1079_v23, %v1095_v38  ;;  %v1105_v63 = vsel %vm1089_vm1, %v1081_v57, %v1097_v10  ;;  %v1388_v23 = vpop.permute.xlu1 %1387  ;;  %v1135_v13 = vsel %vm504_vm5, %v2846_v60, -inf }
 0x29a   : > { %v1398_v56 = vadd.f32 %v2802_v55, %v1388_v23  ;;  %v2917_v27 = vsel %vm427_vm3, -1e+09, %v1105_v63 }
 0x29b   : > { %v1129_v38 = vsel %vm504_vm5, %v2917_v27, -inf }
 0x29c   : > { %v1414_v45 = vmul.f32 0.2, %v1398_v56 }
 0x29d   : > { %811 = vmax.xlane.f32.xlu2 %v810_v16  ;;  %v2896_v16 = vsel %vm425_vm11, -1e+09, %v1103_v46  ;;  %v1391_v46 = vadd.f32 %v2802_v55, %v2640_v18 }
 0x29e   : > { %v1123_v30 = vsel %vm504_vm5, %v2896_v16, -inf }
 0x29f   : > { %1435 = vmax.xlane.f32.xlu0 %v1434_v48  ;;  %817 = vmax.xlane.f32.xlu1 %v816_v14  ;;  %v2904_v48 = vsel %vm425_vm11, -1e+09, %v1417_v59  ;;  %v1411_v14 = vmul.f32 0.2, %v1395_v20  ;;  %vm1406_vm11 = vcmp.gt.f32.partialorder %v1398_v56, 0.0  ;;  %vm1399_vm14 = vcmp.gt.f32.partialorder %v1391_v46, 0.0 }
 0x2a0   : > { %v1437_v19 = vsel %vm504_vm5, %v2904_v48, -inf  ;;  %v1422_v43 = vsel %vm1406_vm11, %v1398_v56, %v1414_v45 }
 0x2a1   : > { %v1419_v1 = vsel %vm1403_vm13, %v1395_v20, %v1411_v14  ;;  %v2939_v58 = vsel %vm430_vm9, -1e+09, %v1422_v43  ;;  %v1407_v20 = vmul.f32 0.2, %v1391_v46  ;;  %v1397_v14 = vadd.f32 %v2802_v55, %v2710_v3 }
 0x2a2   : > { %v2921_v33 = vsel %vm427_vm3, -1e+09, %v1419_v1 }
 0x2a3   : > { %v1443_v41 = vsel %vm504_vm5, %v2921_v33, -inf  ;;  %v1413_v63 = vmul.f32 0.2, %v1397_v14  ;;  %vm1405_vm4 = vcmp.gt.f32.partialorder %v1397_v14, 0.0 }
 0x2a5   : > { %1121 = vmax.xlane.f32.xlu2 %v1120_v36  ;;  %v1098_v36 = vmul.f32 0.2, %v1082_v15  ;;  %v1421_v3 = vsel %vm1405_vm4, %v1397_v14, %v1413_v63 }
 0x2a7   : > { %1127 = vmax.xlane.f32.xlu0 %v1126_v25  ;;  %1118 = vmax.xlane.f32.xlu1 %v1117_v49  ;;  %v1106_v25 = vsel %vm1090_vm10, %v1082_v15, %v1098_v36  ;;  %v1396_v49 = vadd.f32 %v2802_v55, %v2666_v44  ;;  %v1452_v44 = vsel %vm504_vm5, %v2939_v58, -inf  ;;  %v1074_v15 = vpop.permute.xlu0 %1073  ;;  %v2962_v55 = vsel %vm429_vm15, -1e+09, %v1421_v3 }
 0x2a8   : > { %v2935_v57 = vsel %vm428_vm6, -1e+09, %v1106_v25  ;;  %v1084_v53 = vadd.f32 %v2813_v31, %v1074_v15  ;;  %v1449_v56 = vsel %vm504_vm5, %v2962_v55, -inf }
 0x2a9   : > { %v1412_v59 = vmul.f32 0.2, %v1396_v49  ;;  %vm1404_vm3 = vcmp.gt.f32.partialorder %v1396_v49, 0.0  ;;  %v1132_v10 = vsel %vm504_vm5, %v2935_v57, -inf }
 0x2aa   : > { %v1100_v50 = vmul.f32 0.2, %v1084_v53 }
 0x2ab   : > { %v1420_v18 = vsel %vm1404_vm3, %v1396_v49, %v1412_v59 }
 0x2ad   : > { %1124 = vmax.xlane.f32.xlu2 %v1123_v30  ;;  %v1415_v30 = vsel %vm1399_vm14, %v1391_v46, %v1407_v20 }
 0x2af   : > { %1441 = vmax.xlane.f32.xlu0 %v1440_v29  ;;  %1438 = vmax.xlane.f32.xlu1 %v1437_v19  ;;  %v2949_v29 = vsel %vm428_vm6, -1e+09, %v1420_v18  ;;  %v2953_v19 = vsel %vm423_vm2, -1e+09, %v1415_v30  ;;  %vm1092_vm2 = vcmp.gt.f32.partialorder %v1084_v53, 0.0 }
 0x2b0   : > { %v1446_v23 = vsel %vm504_vm5, %v2949_v29, -inf  ;;  %v1431_v1 = vsel %vm504_vm5, %v2953_v19, -inf }
 0x2b5   : > { %1130 = vmax.xlane.f32.xlu2 %v1129_v38  ;;  %v1108_v38 = vsel %vm1092_vm2, %v1084_v53, %v1100_v50 }
 0x2b6   : > { %v2970_v36 = vsel %vm430_vm9, -1e+09, %v1108_v38 }
 0x2b7   : > { %1444 = vmax.xlane.f32.xlu0 %v1443_v41  ;;  %1136 = vmax.xlane.f32.xlu1 %v1135_v13  ;;  %v1138_v37 = vsel %vm504_vm5, %v2970_v36, -inf }
 0x2bf   : > { %1133 = vmax.xlane.f32.xlu0 %v1132_v10  ;;  %1453 = vmax.xlane.f32.xlu1 %v1452_v44 }
 0x2c7   : > { %1447 = vmax.xlane.f32.xlu0 %v1446_v23  ;;  %1432 = vmax.xlane.f32.xlu1 %v1431_v1 }
 0x2cd   : > { %2116 = vrot.lane.b32.xlu2 %v2574_v35, %s2398_s27 }
 0x2cf   : > { %1450 = vmax.xlane.f32.xlu0 %v1449_v56 }
 0x2d5   : > { %2126 = vrot.lane.b32.xlu2 %v2568_v32, %s2399_s28 }
 0x2d7   : > { %1139 = vmax.xlane.f32.xlu0 %v1138_v37 }
 0x2ea   : > { %v510_v31 = vpop.xlane.xlu0 %509  ;;  %v507_v45 = vpop.xlane.xlu1 %506 }
 0x2eb   : > { %v530_v41 = vsub.f32 %v2714_v7, %v510_v31  ;;  %2121 = vrot.lane.b32.xlu0 %v2574_v35, %s2397_s23  ;;  %v529_v1 = vsub.f32 %v2718_v8, %v507_v45 }
 0x2ed   : > { %v539_v13 = vmul.f32 1.442695, %v530_v41  ;;  %v537_v56 = vmul.f32 1.442695, %v529_v1 }
 0x2ef   : > { %2141 = vpow2.f32 %v539_v13 }
 0x2f0   : > { %v522_v25 = vpop.xlane.xlu2 %521 }
 0x2f1   : > { %v534_v32 = vsub.f32 %v2732_v28, %v522_v25 }
 0x2f2   : > { %v516_v11 = vpop.xlane.xlu0 %515  ;;  %v513_v43 = vpop.xlane.xlu1 %512 }
 0x2f3   : > { %v532_v49 = vsub.f32 %v2736_v22, %v516_v11  ;;  %v547_v10 = vmul.f32 1.442695, %v534_v32  ;;  %v531_v8 = vsub.f32 %v2740_v34, %v513_v43 }
 0x2f5   : > { %v2980_v46 = vpop.eup %2141  ;;  %v543_v59 = vmul.f32 1.442695, %v532_v49 }
 0x2f6   : > { %v556_v20 = vsel %vm504_vm5, %v2980_v46, 0.0 }
 0x2f7   : > { %2143 = vpow2.f32 %v543_v59  ;;  %557 = vadd.xlane.f32.xlu1 %v556_v20 }
 0x2f8   : > { %v2985_v7 = vpop.xlane.xlu2 %802  ;;  %2145 = vpow2.f32 %v547_v10 }
 0x2fa   : > { %v525_v44 = vpop.xlane.xlu0 %524  ;;  %v519_v18 = vpop.xlane.xlu1 %518 }
 0x2fb   : > { %v533_v34 = vsub.f32 %v2771_v9, %v519_v18  ;;  %v535_v1 = vsub.f32 %v2767_v2, %v525_v44 }
 0x2fd   : > { %v2987_v30 = vpop.eup %2143  ;;  %v545_v20 = vmul.f32 1.442695, %v533_v34 }
 0x2fe   : > { %v562_v22 = vsel %vm504_vm5, %v2987_v30, 0.0  ;;  %v2991_v23 = vpop.eup %2145 }
 0x2ff   : > { %563 = vadd.xlane.f32.xlu1 %v562_v22  ;;  %v568_v50 = vsel %vm504_vm5, %v2991_v23, 0.0 }
 0x300   : > { %v806_v14 = vpop.xlane.xlu2 %805 }
 0x302   : > { %v797_v28 = vpop.xlane.xlu0 %796  ;;  %v528_v63 = vpop.xlane.xlu1 %527 }
 0x303   : > { %v536_v15 = vsub.f32 %v2799_v54, %v528_v63  ;;  %v819_v53 = vsub.f32 %v2795_v26, %v797_v28  ;;  %v541_v26 = vmul.f32 1.442695, %v531_v8 }
 0x305   : > { %v551_v3 = vmul.f32 1.442695, %v536_v15  ;;  %v827_v37 = vmul.f32 1.442695, %v819_v53 }
 0x307   : > { %569 = vadd.xlane.f32.xlu1 %v568_v50  ;;  %2147 = vpow2.f32 %v551_v3  ;;  %v549_v3 = vmul.f32 1.442695, %v535_v1 }
 0x308   : > { %v2998_v38 = vpop.xlane.xlu2 %808  ;;  %2149 = vpow2.f32 %v537_v56 }
 0x309   : > { %2151 = vpow2.f32 %v827_v37 }
 0x30a   : > { %v3000_v31 = vpop.xlane.xlu0 %814  ;;  %v800_v41 = vpop.xlane.xlu1 %799 }
 0x30b   : > { %v820_v54 = vsub.f32 %v2828_v47, %v800_v41  ;;  %v822_v41 = vsub.f32 %v2791_v51, %v806_v14 }
 0x30d   : > { %v829_v45 = vmul.f32 1.442695, %v820_v54  ;;  %v3004_v13 = vpop.eup %2147 }
 0x30e   : > { %v574_v25 = vsel %vm504_vm5, %v3004_v13, 0.0  ;;  %v3010_v49 = vpop.eup %2149 }
 0x30f   : > { %2153 = vpow2.f32 %v829_v45  ;;  %575 = vadd.xlane.f32.xlu1 %v574_v25  ;;  %v3015_v47 = vpop.eup %2151  ;;  %v553_v43 = vsel %vm504_vm5, %v3010_v49, 0.0  ;;  %v833_v45 = vmul.f32 1.442695, %v822_v41 }
 0x310   : > { %v3008_v11 = vpop.xlane.xlu2 %811  ;;  %2155 = vpow2.f32 %v541_v26  ;;  %v843_v22 = vsel %vm504_vm5, %v3015_v47, 0.0 }
 0x311   : > { %2157 = vpow2.f32 %v545_v20 }
 0x312   : > { %v3012_v32 = vpop.xlane.xlu0 %1435  ;;  %v3021_v10 = vpop.xlane.xlu1 %817  ;;  %2159 = vpow2.f32 %v549_v3 }
 0x313   : > { %v1456_v3 = vsub.f32 %v2854_v62, %v3012_v32 }
 0x315   : > { %554 = vadd.xlane.f32.xlu0 %v553_v43  ;;  %v3019_v59 = vpop.eup %2153  ;;  %v1465_v41 = vmul.f32 1.442695, %v1456_v3 }
 0x316   : > { %v846_v28 = vsel %vm504_vm5, %v3019_v59, 0.0  ;;  %v3027_v18 = vpop.eup %2155 }
 0x317   : > { %844 = vadd.xlane.f32.xlu1 %v843_v22  ;;  %847 = vadd.xlane.f32.xlu2 %v846_v28  ;;  %v559_v15 = vsel %vm504_vm5, %v3027_v18, 0.0  ;;  %v3032_v50 = vpop.eup %2157 }
 0x318   : > { %v1122_v9 = vpop.xlane.xlu2 %1121  ;;  %v565_v44 = vsel %vm504_vm5, %v3032_v50, 0.0  ;;  %v3043_v34 = vpop.eup %2159 }
 0x319   : > { %v1142_v14 = vsub.f32 %v2874_v42, %v1122_v9  ;;  %v823_v9 = vsub.f32 %v2820_v17, %v2998_v38 }
 0x31a   : > { %v1128_v63 = vpop.xlane.xlu0 %1127  ;;  %v1119_v56 = vpop.xlane.xlu1 %1118 }
 0x31b   : > { %v1141_v2 = vsub.f32 %v2882_v21, %v1119_v56  ;;  %v1144_v51 = vsub.f32 %v2878_v52, %v1128_v63  ;;  %v571_v21 = vsel %vm504_vm5, %v3043_v34, 0.0  ;;  %v1151_v28 = vmul.f32 1.442695, %v1142_v14 }
 0x31c   : > { %v835_v56 = vmul.f32 1.442695, %v823_v9 }
 0x31d   : > { %560 = vadd.xlane.f32.xlu0 %v559_v15  ;;  %v1149_v26 = vmul.f32 1.442695, %v1141_v2  ;;  %v1155_v22 = vmul.f32 1.442695, %v1144_v51 }
 0x320   : > { %v1125_v53 = vpop.xlane.xlu2 %1124 }
 0x321   : > { %v1143_v37 = vsub.f32 %v2896_v16, %v1125_v53 }
 0x322   : > { %v3036_v54 = vpop.xlane.xlu0 %1441 }
 0x323   : > { %v1153_v8 = vmul.f32 1.442695, %v1143_v37 }
 0x325   : > { %2161 = vpow2.f32 %v1153_v8  ;;  %566 = vadd.xlane.f32.xlu0 %v565_v44  ;;  %v821_v44 = vsub.f32 %v2763_v0, %v2985_v7  ;;  %v824_v0 = vsub.f32 %v2850_v61, %v3008_v11  ;;  %v1439_v7 = vpop.xlane.xlu1 %1438 }
 0x326   : > { %2163 = vpow2.f32 %v833_v45 }
 0x327   : > { %2165 = vpow2.f32 %v1149_v26  ;;  %v831_v51 = vmul.f32 1.442695, %v821_v44 }
 0x328   : > { %v3041_v25 = vpop.xlane.xlu2 %1130  ;;  %2167 = vpow2.f32 %v1155_v22 }
 0x329   : > { %2169 = vpow2.f32 %v1151_v28  ;;  %v837_v28 = vmul.f32 1.442695, %v824_v0 }
 0x32a   : > { %v1445_v20 = vpop.xlane.xlu0 %1444  ;;  %2171 = vpow2.f32 %v835_v56 }
 0x32b   : > { %v3045_v16 = vpop.eup %2161  ;;  %v1459_v32 = vsub.f32 %v2921_v33, %v1445_v20  ;;  %2173 = vpow2.f32 %v1465_v41 }
 0x32c   : > { %v1171_v43 = vsel %vm504_vm5, %v3045_v16, 0.0  ;;  %v3053_v15 = vpop.eup %2163 }
 0x32d   : > { %572 = vadd.xlane.f32.xlu0 %v571_v21  ;;  %1172 = vadd.xlane.f32.xlu2 %v1171_v43  ;;  %v3057_v42 = vpop.eup %2165  ;;  %v852_v53 = vsel %vm504_vm5, %v3053_v15, 0.0  ;;  %v1471_v33 = vmul.f32 1.442695, %v1459_v32 }
 0x32e   : > { %v3069_v38 = vpop.eup %2167 }
 0x32f   : > { %v3072_v62 = vpop.eup %2169  ;;  %v1174_v45 = vsel %vm504_vm5, %v3069_v38, 0.0  ;;  %2175 = vpow2.f32 %v1471_v33 }
 0x330   : > { %v2117_v1 = vpop.permute.xlu2 %2116  ;;  %2131 = vrot.lane.b32.xlu1 %v2579_v39, %s2399_s28  ;;  %v1165_v39 = vsel %vm504_vm5, %v3057_v42, 0.0  ;;  %v1168_v26 = vsel %vm504_vm5, %v3072_v62, 0.0  ;;  %v3086_v14 = vpop.eup %2171  ;;  %2177 = vpow2.f32 %v831_v51 }
 0x331   : > { %v2118_v52 = vunpack.i.l.bf16 %v2117_v1  ;;  %v2119_v63 = vunpack.i.h.bf16 %v2117_v1  ;;  %v3088_v43 = vpop.eup %2173  ;;  %v855_v20 = vsel %vm504_vm5, %v3086_v14, 0.0  ;;  %2179 = vpow2.f32 %v837_v28 }
 0x332   : > { %v1134_v37 = vpop.xlane.xlu0 %1133  ;;  %v1482_v22 = vsel %vm504_vm5, %v3088_v43, 0.0 }
 0x333   : > { %977 = vmatpush.msrb.mxu3 %v2118_v52  ;;  %v1457_v52 = vsub.f32 %v2904_v48, %v1439_v7  ;;  %v1146_v61 = vsub.f32 %v2935_v57, %v1134_v37  ;;  %v1458_v48 = vsub.f32 %v2900_v12, %v3036_v54 }
 0x335   : > { %978 = vmatpush.msrb.mxu3 %v2119_v63  ;;  %853 = vadd.xlane.f32.xlu2 %v852_v53  ;;  %v3096_v1 = vpop.eup %2175  ;;  %v1467_v3 = vmul.f32 1.442695, %v1457_v52  ;;  %v1159_v56 = vmul.f32 1.442695, %v1146_v61  ;;  %v1469_v32 = vmul.f32 1.442695, %v1458_v48 }
 0x336   : > { %1166 = vadd.xlane.f32.xlu0 %v1165_v39  ;;  %v3099_v9 = vpop.eup %2177  ;;  %v1491_v63 = vsel %vm504_vm5, %v3096_v1, 0.0  ;;  %v1137_v39 = vpop.xlane.xlu1 %1136 }
 0x337   : > { %v849_v53 = vsel %vm504_vm5, %v3099_v9, 0.0  ;;  %v3108_v41 = vpop.eup %2179  ;;  %2181 = vpow2.f32 %v1467_v3  ;;  %v1147_v12 = vsub.f32 %v2846_v60, %v1137_v39 }
 0x338   : > { %v3067_v17 = vpop.permute.xlu2 %2126  ;;  %2183 = vpow2.f32 %v1159_v56  ;;  %v858_v37 = vsel %vm504_vm5, %v3108_v41, 0.0 }
 0x339   : > { %v2128_v8 = vunpack.i.l.bf16 %v3067_v17  ;;  %v2129_v2 = vunpack.i.h.bf16 %v3067_v17  ;;  %2185 = vpow2.f32 %v1469_v32  ;;  %v1161_v0 = vmul.f32 1.442695, %v1147_v12 }
 0x33a   : > { %v1448_v21 = vpop.xlane.xlu0 %1447 }
 0x33b   : > { %1994 = vmatpush.msrb.mxu2 %v2128_v8  ;;  %v1460_v57 = vsub.f32 %v2949_v29, %v1448_v21  ;;  %v825_v29 = vsub.f32 %v2824_v40, %v3000_v31 }
 0x33d   : > { %1995 = vmatpush.msrb.mxu2 %v2129_v2  ;;  %1175 = vadd.xlane.f32.xlu2 %v1174_v45  ;;  %v3115_v45 = vpop.eup %2181  ;;  %v839_v28 = vmul.f32 1.442695, %v825_v29 }
 0x33e   : > { %1169 = vadd.xlane.f32.xlu0 %v1168_v26  ;;  %v1473_v26 = vmul.f32 1.442695, %v1460_v57  ;;  %v3117_v33 = vpop.xlane.xlu1 %1453  ;;  %v3119_v51 = vpop.eup %2183  ;;  %v1485_v54 = vsel %vm504_vm5, %v3115_v45, 0.0  ;;  %v1145_v57 = vsub.f32 %v2917_v27, %v3041_v25 }
 0x33f   : > { %v1180_v21 = vsel %vm504_vm5, %v3119_v51, 0.0 }
 0x340   : > { %2187 = vpow2.f32 %v1473_v26 }
 0x341   : > { %2189 = vpow2.f32 %v1161_v0 }
 0x342   : > { %v3102_v11 = vpop.xlane.xlu0 %1450  ;;  %2191 = vpow2.f32 %v839_v28 }
 0x343   : > { %v1461_v12 = vsub.f32 %v2962_v55, %v3102_v11 }
 0x345   : > { %856 = vadd.xlane.f32.xlu2 %v855_v20 }
 0x346   : > { %1483 = vadd.xlane.f32.xlu0 %v1482_v22  ;;  %v3128_v22 = vpop.eup %2185  ;;  %v1433_v40 = vpop.xlane.xlu1 %1432 }
 0x347   : > { %v3130_v52 = vpop.eup %2187  ;;  %v1488_v31 = vsel %vm504_vm5, %v3128_v22, 0.0  ;;  %v1455_v4 = vsub.f32 %v2953_v19, %v1433_v40 }
 0x348   : > { %v1494_v3 = vsel %vm504_vm5, %v3130_v52, 0.0 }
 0x34a   : > { %v1140_v44 = vpop.xlane.xlu0 %1139 }
 0x34b   : > { %v1148_v61 = vsub.f32 %v2970_v36, %v1140_v44  ;;  %v1157_v44 = vmul.f32 1.442695, %v1145_v57 }
 0x34d   : > { %1492 = vadd.xlane.f32.xlu2 %v1491_v63  ;;  %v826_v63 = vsub.f32 %v2858_v24, %v3021_v10  ;;  %v1163_v36 = vmul.f32 1.442695, %v1148_v61 }
 0x34e   : > { %850 = vadd.xlane.f32.xlu0 %v849_v53 }
 0x34f   : > { %v841_v53 = vmul.f32 1.442695, %v826_v63  ;;  %2193 = vpow2.f32 %v1163_v36 }
 0x351   : > { %2195 = vpow2.f32 %v841_v53 }
 0x355   : > { %859 = vadd.xlane.f32.xlu2 %v858_v37 }
 0x35a   : > { %1486 = vadd.xlane.f32.xlu1 %v1485_v54 }
 0x35d   : > { %v2122_v7 = vpop.permute.xlu0 %2121  ;;  %1181 = vadd.xlane.f32.xlu2 %v1180_v21  ;;  %v1475_v21 = vmul.f32 1.442695, %v1461_v12 }
 0x35e   : > { %v2123_v20 = vunpack.i.l.bf16 %v2122_v7  ;;  %v2124_v60 = vunpack.i.h.bf16 %v2122_v7 }
 0x360   : > { %1291 = vmatpush.msrb.mxu0 %v2123_v20  ;;  %v1462_v20 = vsub.f32 %v2939_v58, %v3117_v33 }
 0x362   : > { %2136 = vrot.lane.b32.xlu0 %v2574_v35, %s2399_s28  ;;  %1292 = vmatpush.msrb.mxu0 %v2124_v60  ;;  %v3145_v35 = vpop.eup %2189  ;;  %v1477_v11 = vmul.f32 1.442695, %v1462_v20 }
 0x363   : > { %1489 = vadd.xlane.f32.xlu1 %v1488_v31  ;;  %v3149_v39 = vpop.eup %2191 }
 0x364   : > { %1599 = vmatpush.msra.mxu0 %v2083_v5  ;;  %v1183_v5 = vsel %vm504_vm5, %v3145_v35, 0.0  ;;  %v3158_v10 = vpop.eup %2193 }
 0x365   : > { %1495 = vadd.xlane.f32.xlu2 %v1494_v3  ;;  %v3160_v56 = vpop.eup %2195  ;;  %v1186_v17 = vsel %vm504_vm5, %v3158_v10, 0.0 }
 0x366   : > { %1600 = vmatpush.msra.mxu0 %v2084_v6  ;;  %v861_v6 = vsel %vm504_vm5, %v3149_v39, 0.0  ;;  %v864_v19 = vsel %vm504_vm5, %v3160_v56, 0.0 }
 0x368   : > { %1601 = vmatpush.msra.mxu0 %v2128_v8  ;;  %v1463_v8 = vmul.f32 1.442695, %v1455_v4 }
 0x36a   : > { %1602 = vmatpush.msra.mxu0 %v2129_v2  ;;  %v558_v24 = vpop.xlane.xlu1 %557  ;;  %2197 = vpow2.f32 %v1463_v8 }
 0x36b   : > { %1184 = vadd.xlane.f32.xlu1 %v1183_v5 }
 0x36d   : > { %862 = vadd.xlane.f32.xlu2 %v861_v6 }
 0x370   : > { %v3168_v48 = vpop.eup %2197 }
 0x371   : > { %v1479_v32 = vsel %vm504_vm5, %v3168_v48, 0.0 }
 0x372   : > { %v3164_v2 = vpop.xlane.xlu1 %563 }
 0x373   : > { %1187 = vadd.xlane.f32.xlu1 %v1186_v17 }
 0x375   : > { %865 = vadd.xlane.f32.xlu2 %v864_v19 }
 0x37a   : > { %v570_v37 = vpop.xlane.xlu1 %569 }
 0x37b   : > { %2199 = vrcp.f32 %v570_v37 }
 0x37c   : > { %2201 = vpow2.f32 %v1157_v44 }
 0x37d   : > { %1480 = vadd.xlane.f32.xlu2 %v1479_v32  ;;  %2203 = vrcp.f32 %v558_v24 }
 0x381   : > { %v2200_v26 = vpop.eup %2199 }
 0x382   : > { %v590_v54 = vmul.f32 %v2200_v26, %v570_v37  ;;  %v3176_v7 = vpop.eup %2201 }
 0x383   : > { %v1177_v55 = vsel %vm504_vm5, %v3176_v7, 0.0  ;;  %v2204_v28 = vpop.eup %2203 }
 0x384   : > { %v598_v29 = vsub.f32 2.0, %v590_v54  ;;  %v586_v63 = vmul.f32 %v2204_v28, %v558_v24 }
 0x386   : > { %v606_v0 = vmul.f32 %v2200_v26, %v598_v29  ;;  %v594_v36 = vsub.f32 2.0, %v586_v63 }
 0x388   : > { %v555_v27 = vpop.xlane.xlu0 %554  ;;  %v614_v25 = vmul.f32 %v2991_v23, %v606_v0  ;;  %v576_v23 = vpop.xlane.xlu1 %575  ;;  %v602_v17 = vmul.f32 %v2204_v28, %v594_v36 }
 0x389   : > { %2205 = vrcp.f32 %v555_v27 }
 0x38a   : > { %2207 = vpow2.f32 %v1475_v21  ;;  %1913 = vmatmul.msk.f32.vlgmr.msra.gmra.mxu3 %vm504_vm5, %v614_v25  ;;  %v3191_v6 = vpop.xlane.xlu2 %847  ;;  %v610_v37 = vmul.f32 %v2980_v46, %v602_v17 }
 0x38b   : > { %2209 = vpow2.f32 %v1477_v11 }
 0x38c   : > { %1178 = vadd.xlane.f32.xlu0 %v1177_v55 }
 0x38f   : > { %v2206_v60 = vpop.eup %2205 }
 0x390   : > { %v3184_v61 = vpop.eup %2207  ;;  %v585_v40 = vmul.f32 %v2206_v60, %v555_v27  ;;  %v561_v31 = vpop.xlane.xlu0 %560 }
 0x391   : > { %2211 = vrcp.f32 %v561_v31  ;;  %v1497_v58 = vsel %vm504_vm5, %v3184_v61, 0.0  ;;  %v3189_v5 = vpop.eup %2209  ;;  %v845_v24 = vpop.xlane.xlu1 %844 }
 0x392   : > { %v593_v3 = vsub.f32 2.0, %v585_v40  ;;  %2213 = vrcp.f32 %v3164_v2  ;;  %v1500_v57 = vsel %vm504_vm5, %v3189_v5, 0.0 }
 0x393   : > { %2215 = vrcp.f32 %v576_v23 }
 0x394   : > { %v601_v33 = vmul.f32 %v2206_v60, %v593_v3  ;;  %1498 = vadd.xlane.f32.xlu0 %v1497_v58 }
 0x396   : > { %v609_v53 = vmul.f32 %v3010_v49, %v601_v33 }
 0x397   : > { %v2212_v4 = vpop.eup %2211 }
 0x398   : > { %1908 = vmatmul.msk.f32.vlgmr.msra.gmra.mxu2 %vm504_vm5, %v609_v53  ;;  %v567_v8 = vpop.xlane.xlu0 %566  ;;  %v587_v19 = vmul.f32 %v2212_v4, %v561_v31  ;;  %v2214_v32 = vpop.eup %2213 }
 0x399   : > { %v588_v12 = vmul.f32 %v2214_v32, %v3164_v2  ;;  %v2216_v0 = vpop.eup %2215 }
 0x39a   : > { %v595_v49 = vsub.f32 2.0, %v587_v19  ;;  %v592_v2 = vmul.f32 %v2216_v0, %v576_v23 }
 0x39b   : > { %v596_v25 = vsub.f32 2.0, %v588_v12 }
 0x39c   : > { %1501 = vadd.xlane.f32.xlu0 %v1500_v57  ;;  %v603_v54 = vmul.f32 %v2212_v4, %v595_v49  ;;  %v600_v58 = vsub.f32 2.0, %v592_v2 }
 0x39d   : > { %v604_v31 = vmul.f32 %v2214_v32, %v596_v25 }
 0x39e   : > { %v611_v20 = vmul.f32 %v3027_v18, %v603_v54 }
 0x39f   : > { %v612_v53 = vmul.f32 %v2987_v30, %v604_v31 }
 0x3a0   : > { %v573_v44 = vpop.xlane.xlu0 %572  ;;  %v3198_v26 = vpop.xlane.xlu2 %1172  ;;  %1909 = vmatmul.msk.f32.gmra.mxu2 %vm504_vm5, %v610_v37 }
 0x3a1   : > { %2217 = vrcp.f32 %v573_v44 }
 0x3a2   : > { %2219 = vrcp.f32 %v567_v8  ;;  %v2132_v29 = vpop.permute.xlu1 %2131 }
 0x3a3   : > { %v2133_v21 = vunpack.i.l.bf16 %v2132_v29  ;;  %v2134_v27 = vunpack.i.h.bf16 %v2132_v29  ;;  %2221 = vrcp.f32 %v845_v24 }
 0x3a5   : > { %1603 = vmatpush.msra.mxu0 %v2133_v21  ;;  %1996 = vmatpush.msrb.mxu2 %v2133_v21 }
 0x3a7   : > { %v2218_v46 = vpop.eup %2217  ;;  %1604 = vmatpush.msra.mxu0 %v2134_v27  ;;  %1997 = vmatpush.msrb.mxu2 %v2134_v27 }
 0x3a8   : > { %v2220_v55 = vpop.eup %2219  ;;  %v591_v11 = vmul.f32 %v2218_v46, %v573_v44  ;;  %v3203_v28 = vpop.xlane.xlu2 %853  ;;  %1910 = vmatmul.msk.f32.gmra.mxu2 %vm504_vm5, %v611_v20 }
 0x3a9   : > { %v1167_v60 = vpop.xlane.xlu0 %1166  ;;  %v589_v63 = vmul.f32 %v2220_v55, %v567_v8  ;;  %v2222_v18 = vpop.eup %2221  ;;  %v608_v8 = vmul.f32 %v2216_v0, %v600_v58 }
 0x3aa   : > { %v599_v40 = vsub.f32 2.0, %v591_v11  ;;  %2223 = vrcp.f32 %v1167_v60  ;;  %v875_v57 = vmul.f32 %v2222_v18, %v845_v24 }
 0x3ab   : > { %v597_v36 = vsub.f32 2.0, %v589_v63  ;;  %2225 = vrcp.f32 %v3191_v6  ;;  %v616_v44 = vmul.f32 %v3004_v13, %v608_v8 }
 0x3ac   : > { %v607_v3 = vmul.f32 %v2218_v46, %v599_v40  ;;  %2227 = vrcp.f32 %v3198_v26  ;;  %v883_v30 = vsub.f32 2.0, %v875_v57 }
 0x3ae   : > { %v615_v33 = vmul.f32 %v3043_v34, %v607_v3  ;;  %v605_v34 = vmul.f32 %v2220_v55, %v597_v36  ;;  %v891_v25 = vmul.f32 %v2222_v18, %v883_v30 }
 0x3b0   : > { %v2224_v4 = vpop.eup %2223  ;;  %v1176_v17 = vpop.xlane.xlu2 %1175  ;;  %1914 = vmatmul.msk.f32.gmra.mxu3 %vm504_vm5, %v615_v33  ;;  %1911 = vmatmul.msk.f32.gmra.mxu2 %vm504_vm5, %v612_v53  ;;  %v613_v29 = vmul.f32 %v3032_v50, %v605_v34  ;;  %v899_v50 = vmul.f32 %v3015_v47, %v891_v25 }
 0x3b1   : > { %v1197_v23 = vmul.f32 %v2224_v4, %v1167_v60  ;;  %v1170_v19 = vpop.xlane.xlu0 %1169  ;;  %v2226_v32 = vpop.eup %2225 }
 0x3b2   : > { %2229 = vrcp.f32 %v1170_v19  ;;  %v2228_v12 = vpop.eup %2227  ;;  %v876_v0 = vmul.f32 %v2226_v32, %v3191_v6 }
 0x3b3   : > { %v1205_v37 = vsub.f32 2.0, %v1197_v23  ;;  %2231 = vrcp.f32 %v1176_v17  ;;  %v1199_v13 = vmul.f32 %v2228_v12, %v3198_v26 }
 0x3b4   : > { %v884_v55 = vsub.f32 2.0, %v876_v0  ;;  %2233 = vrcp.f32 %v3203_v28 }
 0x3b5   : > { %v1213_v49 = vmul.f32 %v2224_v4, %v1205_v37  ;;  %v1207_v11 = vsub.f32 2.0, %v1199_v13 }
 0x3b6   : > { %v892_v31 = vmul.f32 %v2226_v32, %v884_v55 }
 0x3b7   : > { %v1221_v54 = vmul.f32 %v3057_v42, %v1213_v49  ;;  %v1215_v26 = vmul.f32 %v2228_v12, %v1207_v11 }
 0x3b8   : > { %v2230_v21 = vpop.eup %2229  ;;  %v857_v27 = vpop.xlane.xlu2 %856  ;;  %1915 = vmatmul.msk.f32.gmra.mxu3 %vm504_vm5, %v616_v44  ;;  %1912 = vmatmul.msk.f32.gmra.mxu2 %vm504_vm5, %v613_v29  ;;  %v900_v47 = vmul.f32 %v3019_v59, %v892_v31 }
 0x3b9   : > { %v1198_v46 = vmul.f32 %v2230_v21, %v1170_v19  ;;  %1940 = vmatmul.msk.f32.vlgmr.msrb.gmra.mxu0 %vm504_vm5, %v1221_v54  ;;  %v1484_v24 = vpop.xlane.xlu0 %1483  ;;  %v2232_v2 = vpop.eup %2231 }
 0x3ba   : > { %v1200_v63 = vmul.f32 %v2232_v2, %v1176_v17  ;;  %v2234_v3 = vpop.eup %2233 }
 0x3bb   : > { %v1206_v20 = vsub.f32 2.0, %v1198_v46  ;;  %v878_v4 = vmul.f32 %v2234_v3, %v3203_v28 }
 0x3bc   : > { %v1208_v58 = vsub.f32 2.0, %v1200_v63 }
 0x3bd   : > { %v1214_v42 = vmul.f32 %v2230_v21, %v1206_v20  ;;  %v886_v57 = vsub.f32 2.0, %v878_v4 }
 0x3be   : > { %v1216_v23 = vmul.f32 %v2232_v2, %v1208_v58 }
 0x3bf   : > { %v1222_v60 = vmul.f32 %v3072_v62, %v1214_v42  ;;  %v1223_v62 = vmul.f32 %v3045_v16, %v1215_v26  ;;  %v894_v28 = vmul.f32 %v2234_v3, %v886_v57 }
 0x3c0   : > { %v3222_v40 = vpop.xlane.xlu2 %1492  ;;  %1924 = vmatmul.msk.f32.vlgmr.msrb.gmra.mxu3 %vm504_vm5, %v899_v50  ;;  %v1224_v34 = vmul.f32 %v3069_v38, %v1216_v23 }
 0x3c1   : > { %1941 = vmatmul.msk.f32.gmra.mxu0 %vm504_vm5, %v1222_v60  ;;  %v851_v6 = vpop.xlane.xlu0 %850  ;;  %v902_v38 = vmul.f32 %v3053_v15, %v894_v28 }
 0x3c2   : > { %2235 = vrcp.f32 %v851_v6 }
 0x3c3   : > { %2237 = vrcp.f32 %v1484_v24 }
 0x3c4   : > { %2239 = vrcp.f32 %v857_v27 }
 0x3c8   : > { %v2236_v33 = vpop.eup %2235  ;;  %v860_v18 = vpop.xlane.xlu2 %859  ;;  %1925 = vmatmul.msk.f32.gmra.mxu3 %vm504_vm5, %v900_v47 }
 0x3c9   : > { %v877_v36 = vmul.f32 %v2236_v33, %v851_v6  ;;  %1942 = vmatmul.msk.f32.gmra.mxu0 %vm504_vm5, %v1223_v62  ;;  %v2238_v53 = vpop.eup %2237 }
 0x3ca   : > { %v1512_v19 = vmul.f32 %v2238_v53, %v1484_v24  ;;  %v2240_v37 = vpop.eup %2239 }
 0x3cb   : > { %v885_v17 = vsub.f32 2.0, %v877_v36  ;;  %v879_v30 = vmul.f32 %v2240_v37, %v857_v27 }
 0x3cc   : > { %v1520_v32 = vsub.f32 2.0, %v1512_v19 }
 0x3cd   : > { %v893_v8 = vmul.f32 %v2236_v33, %v885_v17  ;;  %v1487_v59 = vpop.xlane.xlu1 %1486 }
 0x3ce   : > { %2241 = vrcp.f32 %v1487_v59  ;;  %v1528_v54 = vmul.f32 %v2238_v53, %v1520_v32 }
 0x3cf   : > { %v901_v16 = vmul.f32 %v3099_v9, %v893_v8  ;;  %2243 = vrcp.f32 %v860_v18  ;;  %v887_v9 = vsub.f32 2.0, %v879_v30 }
 0x3d0   : > { %v3234_v49 = vpop.xlane.xlu2 %1181  ;;  %v1536_v13 = vmul.f32 %v3088_v43, %v1528_v54 }
 0x3d1   : > { %1926 = vmatmul.msk.f32.gmra.mxu3 %vm504_vm5, %v901_v16  ;;  %1943 = vmatmul.msk.f32.gmra.mxu0 %vm504_vm5, %v1224_v34  ;;  %v895_v27 = vmul.f32 %v2240_v37, %v887_v9 }
 0x3d3   : > { %v903_v15 = vmul.f32 %v3086_v14, %v895_v27 }
 0x3d4   : > { %v2137_v44 = vpop.permute.xlu0 %2136  ;;  %v2242_v12 = vpop.eup %2241 }
 0x3d5   : > { %v2138_v29 = vunpack.i.l.bf16 %v2137_v44  ;;  %v1513_v21 = vmul.f32 %v2242_v12, %v1487_v59  ;;  %v2139_v24 = vunpack.i.h.bf16 %v2137_v44  ;;  %v2244_v0 = vpop.eup %2243 }
 0x3d6   : > { %v1490_v46 = vpop.xlane.xlu1 %1489  ;;  %v880_v42 = vmul.f32 %v2244_v0, %v860_v18 }
 0x3d7   : > { %2245 = vrcp.f32 %v1490_v46  ;;  %1605 = vmatpush.msra.mxu0 %v2138_v29  ;;  %1998 = vmatpush.msrb.mxu2 %v2138_v29  ;;  %v1521_v20 = vsub.f32 2.0, %v1513_v21 }
 0x3d8   : > { %v1496_v25 = vpop.xlane.xlu2 %1495  ;;  %2247 = vrcp.f32 %v3222_v40  ;;  %v888_v60 = vsub.f32 2.0, %v880_v42 }
 0x3d9   : > { %1927 = vmatmul.msk.f32.gmra.mxu3 %vm504_vm5, %v902_v38  ;;  %1606 = vmatpush.msra.mxu0 %v2139_v24  ;;  %v1529_v50 = vmul.f32 %v2242_v12, %v1521_v20 }
 0x3da   : > { %1999 = vmatpush.msrb.mxu2 %v2139_v24  ;;  %v896_v26 = vmul.f32 %v2244_v0, %v888_v60 }
 0x3db   : > { %1957 = vmatmul.msk.f32.vlgmr.msrb.gmra.mxu2 %vm504_vm5, %v1536_v13  ;;  %v1537_v43 = vmul.f32 %v3115_v45, %v1529_v50 }
 0x3dc   : > { %v904_v58 = vmul.f32 %v3108_v41, %v896_v26 }
 0x3dd   : > { %v2246_v55 = vpop.eup %2245 }
 0x3de   : > { %v1514_v11 = vmul.f32 %v2246_v55, %v1490_v46  ;;  %v2248_v31 = vpop.eup %2247  ;;  %v1185_v37 = vpop.xlane.xlu1 %1184 }
 0x3df   : > { %v1515_v63 = vmul.f32 %v2248_v31, %v3222_v40 }
 0x3e0   : > { %v863_v2 = vpop.xlane.xlu2 %862  ;;  %v1522_v6 = vsub.f32 2.0, %v1514_v11 }
 0x3e1   : > { %2249 = vrcp.f32 %v863_v2  ;;  %1928 = vmatmul.msk.f32.gmra.mxu3 %vm504_vm5, %v903_v15  ;;  %v1523_v33 = vsub.f32 2.0, %v1515_v63 }
 0x3e2   : > { %2251 = vrcp.f32 %v1496_v25  ;;  %v1530_v47 = vmul.f32 %v2246_v55, %v1522_v6 }
 0x3e3   : > { %1958 = vmatmul.msk.f32.gmra.mxu2 %vm504_vm5, %v1537_v43  ;;  %v1531_v4 = vmul.f32 %v2248_v31, %v1523_v33 }
 0x3e4   : > { %v1538_v18 = vmul.f32 %v3128_v22, %v1530_v47 }
 0x3e5   : > { %v1539_v8 = vmul.f32 %v3096_v1, %v1531_v4 }
 0x3e7   : > { %v2250_v3 = vpop.eup %2249 }
 0x3e8   : > { %v881_v62 = vmul.f32 %v2250_v3, %v863_v2  ;;  %v866_v14 = vpop.xlane.xlu2 %865  ;;  %v2252_v45 = vpop.eup %2251 }
 0x3e9   : > { %2253 = vrcp.f32 %v866_v14  ;;  %1929 = vmatmul.msk.f32.gmra.mxu3 %vm504_vm5, %v904_v58  ;;  %v1516_v23 = vmul.f32 %v2252_v45, %v1496_v25 }
 0x3ea   : > { %v889_v36 = vsub.f32 2.0, %v881_v62  ;;  %2255 = vrcp.f32 %v3234_v49 }
 0x3eb   : > { %1959 = vmatmul.msk.f32.gmra.mxu2 %vm504_vm5, %v1538_v18  ;;  %v1524_v41 = vsub.f32 2.0, %v1516_v23 }
 0x3ec   : > { %v897_v53 = vmul.f32 %v2250_v3, %v889_v36 }
 0x3ed   : > { %v1532_v57 = vmul.f32 %v2252_v45, %v1524_v41 }
 0x3ee   : > { %v905_v40 = vmul.f32 %v3149_v39, %v897_v53 }
 0x3ef   : > { %v2254_v17 = vpop.eup %2253  ;;  %v1540_v34 = vmul.f32 %v3130_v52, %v1532_v57  ;;  %v1188_v52 = vpop.xlane.xlu1 %1187 }
 0x3f0   : > { %v882_v19 = vmul.f32 %v2254_v17, %v866_v14  ;;  %v2256_v32 = vpop.eup %2255 }
 0x3f1   : > { %1930 = vmatmul.msk.f32.gmra.mxu3 %vm504_vm5, %v905_v40  ;;  %v1202_v44 = vmul.f32 %v2256_v32, %v3234_v49  ;;  %v1481_v49 = vpop.xlane.xlu2 %1480 }
 0x3f2   : > { %v890_v59 = vsub.f32 2.0, %v882_v19 }
 0x3f3   : > { %1960 = vmatmul.msk.f32.gmra.mxu2 %vm504_vm5, %v1539_v8  ;;  %v1210_v29 = vsub.f32 2.0, %v1202_v44 }
 0x3f4   : > { %v898_v22 = vmul.f32 %v2254_v17, %v890_v59 }
 0x3f5   : > { %v1218_v38 = vmul.f32 %v2256_v32, %v1210_v29 }
 0x3f6   : > { %v906_v16 = vmul.f32 %v3160_v56, %v898_v22 }
 0x3f7   : > { %v1226_v27 = vmul.f32 %v3119_v51, %v1218_v38 }
 0x3f9   : > { %1931 = vmatmul.msk.f32.gmra.mxu3 %vm504_vm5, %v906_v16 }
 0x3fb   : > { %1961 = vmatmul.msk.f32.gmra.mxu2 %vm504_vm5, %v1540_v34 }
 0x3ff   : > { %v1179_v39 = vpop.xlane.xlu0 %1178 }
 0x400   : > { %2257 = vrcp.f32 %v1179_v39 }
 0x401   : > { %2259 = vrcp.f32 %v1185_v37 }
 0x406   : > { %v2258_v1 = vpop.eup %2257 }
 0x407   : > { %v1201_v28 = vmul.f32 %v2258_v1, %v1179_v39  ;;  %v1499_v30 = vpop.xlane.xlu0 %1498  ;;  %v2260_v54 = vpop.eup %2259 }
 0x408   : > { %2261 = vrcp.f32 %v1499_v30  ;;  %v1203_v0 = vmul.f32 %v2260_v54, %v1185_v37 }
 0x409   : > { %v1209_v56 = vsub.f32 2.0, %v1201_v28  ;;  %2263 = vrcp.f32 %v1188_v52 }
 0x40a   : > { %v1211_v20 = vsub.f32 2.0, %v1203_v0 }
 0x40b   : > { %v1217_v12 = vmul.f32 %v2258_v1, %v1209_v56 }
 0x40c   : > { %v1219_v11 = vmul.f32 %v2260_v54, %v1211_v20 }
 0x40d   : > { %v1225_v21 = vmul.f32 %v3176_v7, %v1217_v12  ;;  %v3274_v58 = vpop.f32.mrf.mxu3 }
 0x40e   : > { %v2262_v46 = vpop.eup %2261  ;;  %v1227_v43 = vmul.f32 %v3145_v35, %v1219_v11 }
 0x40f   : > { %v1517_v9 = vmul.f32 %v2262_v46, %v1499_v30  ;;  %1944 = vmatmul.msk.f32.gmra.mxu0 %vm504_vm5, %v1225_v21  ;;  %v1502_v24 = vpop.xlane.xlu0 %1501  ;;  %v2264_v55 = vpop.eup %2263 }
 0x410   : > { %2265 = vrcp.f32 %v1502_v24  ;;  %v1204_v60 = vmul.f32 %v2264_v55, %v1188_v52 }
 0x411   : > { %v1525_v25 = vsub.f32 2.0, %v1517_v9  ;;  %2267 = vrcp.f32 %v1481_v49 }
 0x412   : > { %v1212_v6 = vsub.f32 2.0, %v1204_v60 }
 0x413   : > { %v1533_v13 = vmul.f32 %v2262_v46, %v1525_v25 }
 0x415   : > { %v1541_v42 = vmul.f32 %v3184_v61, %v1533_v13  ;;  %v1220_v61 = vmul.f32 %v2264_v55, %v1212_v6 }
 0x416   : > { %v2266_v50 = vpop.eup %2265 }
 0x417   : > { %1945 = vmatmul.msk.f32.gmra.mxu0 %vm504_vm5, %v1226_v27  ;;  %1962 = vmatmul.msk.f32.gmra.mxu2 %vm504_vm5, %v1541_v42  ;;  %v1518_v7 = vmul.f32 %v2266_v50, %v1502_v24  ;;  %v2268_v31 = vpop.eup %2267  ;;  %v1228_v47 = vmul.f32 %v3158_v10, %v1220_v61 }
 0x418   : > { %v1511_v26 = vmul.f32 %v2268_v31, %v1481_v49 }
 0x419   : > { %v1526_v15 = vsub.f32 2.0, %v1518_v7 }
 0x41a   : > { %v1519_v63 = vsub.f32 2.0, %v1511_v26 }
 0x41b   : > { %v1534_v2 = vmul.f32 %v2266_v50, %v1526_v15  ;;  %v3277_v35 = vpop.f32.mrf.mxu2 }
 0x41c   : > { %v1527_v3 = vmul.f32 %v2268_v31, %v1519_v63 }
 0x41d   : > { %v1542_v51 = vmul.f32 %v3189_v5, %v1534_v2 }
 0x41e   : > { %v1535_v62 = vmul.f32 %v3168_v48, %v1527_v3 }
 0x41f   : > { %1946 = vmatmul.msk.f32.gmra.mxu0 %vm504_vm5, %v1227_v43  ;;  %1963 = vmatmul.msk.f32.gmra.mxu2 %vm504_vm5, %v1542_v51 }
 0x423   : > { %v3282_v18 = vpop.f32.mrf.mxu2 }
 0x427   : > { %1947 = vmatmul.msk.f32.gmra.mxu0 %vm504_vm5, %v1228_v47 }
 0x42b   : > { %v3286_v48 = vpop.f32.mrf.mxu2 }
 0x42f   : > { %1956 = vmatmul.msk.f32.vlgmr.msra.gmra.mxu0 %vm504_vm5, %v1535_v62 }
 0x433   : > { %v3280_v5 = vpop.f32.mrf.mxu3  ;;  %v3292_v16 = vpop.f32.mrf.mxu2 }
 0x436   : > { %v1294_v14 = vpop.f32.mrf.mxu0 }
 0x437   : > { %v1326_v33 = vmul.f32 1.442695, %v1294_v14  ;;  %vm1318_vm6 = vcmp.gt.f32.partialorder %v1294_v14, 0.0 }
 0x439   : > { %2269 = vpow2.f32 %v1326_v33 }
 0x43b   : > { %v3284_v45 = vpop.f32.mrf.mxu3  ;;  %v3295_v56 = vpop.f32.mrf.mxu2 }
 0x43e   : > { %v1297_v10 = vpop.f32.mrf.mxu0 }
 0x43f   : > { %v2270_v36 = vpop.eup %2269  ;;  %v1328_v53 = vmul.f32 1.442695, %v1297_v10  ;;  %vm1319_vm15 = vcmp.gt.f32.partialorder %v1297_v10, 0.0 }
 0x440   : > { %v1948_v4 = vadd.f32 -1.0, %v2270_v36 }
 0x441   : > { %2271 = vpow2.f32 %v1328_v53 }
 0x442   : > { %v1350_v23 = vsel %vm1318_vm6, %v1294_v14, %v1948_v4 }
 0x443   : > { %1712 = vrot.lane.b32.xlu2 %v1350_v23, %s2397_s23  ;;  %v980_v40 = vpop.f32.mrf.mxu3 }
 0x444   : > { %v1012_v59 = vmul.f32 1.442695, %v980_v40  ;;  %vm1004_vm7 = vcmp.gt.f32.partialorder %v980_v40, 0.0 }
 0x446   : > { %v1300_v17 = vpop.f32.mrf.mxu0 }
 0x447   : > { %v2272_v19 = vpop.eup %2271  ;;  %v1330_v41 = vmul.f32 1.442695, %v1300_v17  ;;  %vm1320_vm9 = vcmp.gt.f32.partialorder %v1300_v17, 0.0 }
 0x448   : > { %v1949_v8 = vadd.f32 -1.0, %v2272_v19 }
 0x449   : > { %2273 = vpow2.f32 %v1330_v41 }
 0x44a   : > { %v1351_v22 = vsel %vm1319_vm15, %v1297_v10, %v1949_v8  ;;  %2275 = vpow2.f32 %v1012_v59 }
 0x44b   : > { %1714 = vrot.lane.b32.xlu0 %v1351_v22, %s2397_s23  ;;  %v3290_v57 = vpop.f32.mrf.mxu3 }
 0x44c   : > { %v1014_v11 = vmul.f32 1.442695, %v3290_v57  ;;  %vm1005_vm10 = vcmp.gt.f32.partialorder %v3290_v57, 0.0 }
 0x44e   : > { %v1303_v34 = vpop.f32.mrf.mxu0 }
 0x44f   : > { %v2274_v39 = vpop.eup %2273  ;;  %v1332_v37 = vmul.f32 1.442695, %v1303_v34  ;;  %vm1321_vm8 = vcmp.gt.f32.partialorder %v1303_v34, 0.0 }
 0x450   : > { %v1950_v32 = vadd.f32 -1.0, %v2274_v39  ;;  %v2276_v28 = vpop.eup %2275 }
 0x451   : > { %2277 = vpow2.f32 %v1332_v37  ;;  %v1932_v12 = vadd.f32 -1.0, %v2276_v28 }
 0x452   : > { %v1352_v1 = vsel %vm1320_vm9, %v1300_v17, %v1950_v32 }
 0x453   : > { %1716 = vrot.lane.b32.xlu1 %v1352_v1, %s2397_s23  ;;  %v1036_v21 = vsel %vm1004_vm7, %v980_v40, %v1932_v12 }
 0x454   : > { %v986_v30 = vpop.f32.mrf.mxu3 }
 0x455   : > { %v1016_v44 = vmul.f32 1.442695, %v986_v30  ;;  %vm1006_vm12 = vcmp.gt.f32.partialorder %v986_v30, 0.0 }
 0x457   : > { %v2278_v54 = vpop.eup %2277  ;;  %2279 = vpow2.f32 %v1016_v44 }
 0x458   : > { %v1951_v29 = vadd.f32 -1.0, %v2278_v54 }
 0x45a   : > { %v1353_v52 = vsel %vm1321_vm8, %v1303_v34, %v1951_v29 }
 0x45b   : > { %1718 = vrot.lane.b32.xlu2 %v1353_v52, %s2397_s23  ;;  %1680 = vrot.lane.b32.xlu1 %v1036_v21, %s2399_s28 }
 0x45c   : > { %v989_v27 = vpop.f32.mrf.mxu3 }
 0x45d   : > { %v2280_v46 = vpop.eup %2279  ;;  %v1018_v43 = vmul.f32 1.442695, %v989_v27  ;;  %vm1007_vm3 = vcmp.gt.f32.partialorder %v989_v27, 0.0 }
 0x45e   : > { %v1934_v9 = vadd.f32 -1.0, %v2280_v46  ;;  %v1611_v24 = vpop.f32.mrf.mxu2 }
 0x45f   : > { %v1642_v38 = vmul.f32 1.442695, %v1611_v24  ;;  %vm1633_vm1 = vcmp.gt.f32.partialorder %v1611_v24, 0.0 }
 0x460   : > { %v1038_v0 = vsel %vm1006_vm12, %v986_v30, %v1934_v9 }
 0x461   : > { %2281 = vpow2.f32 %v1642_v38 }
 0x463   : > { %1684 = vrot.lane.b32.xlu2 %v1038_v0, %s2399_s28 }
 0x464   : > { %v992_v7 = vpop.f32.mrf.mxu3 }
 0x465   : > { %v1020_v51 = vmul.f32 1.442695, %v992_v7  ;;  %vm1008_vm14 = vcmp.gt.f32.partialorder %v992_v7, 0.0 }
 0x466   : > { %v3301_v49 = vpop.f32.mrf.mxu2 }
 0x467   : > { %v2282_v25 = vpop.eup %2281  ;;  %v1644_v10 = vmul.f32 1.442695, %v3301_v49  ;;  %vm1634_vm2 = vcmp.gt.f32.partialorder %v3301_v49, 0.0 }
 0x468   : > { %v1965_v13 = vadd.f32 -1.0, %v2282_v25 }
 0x46a   : > { %v1665_v20 = vsel %vm1633_vm1, %v1611_v24, %v1965_v13 }
 0x46b   : > { %1746 = vrot.lane.b32.xlu2 %v1665_v20, %s2398_s27 }
 0x46c   : > { %v3308_v61 = vpop.f32.mrf.mxu3 }
 0x46d   : > { %v1022_v23 = vmul.f32 1.442695, %v3308_v61  ;;  %vm1009_vm15 = vcmp.gt.f32.partialorder %v3308_v61, 0.0 }
 0x46e   : > { %v3303_v42 = vpop.f32.mrf.mxu2 }
 0x46f   : > { %v1646_v53 = vmul.f32 1.442695, %v3303_v42  ;;  %vm1635_vm6 = vcmp.gt.f32.partialorder %v3303_v42, 0.0 }
 0x474   : > { %v3320_v41 = vpop.f32.mrf.mxu3 }
 0x475   : > { %v1024_v0 = vmul.f32 1.442695, %v3320_v41  ;;  %vm1010_vm12 = vcmp.gt.f32.partialorder %v3320_v41, 0.0 }
 0x476   : > { %v3306_v60 = vpop.f32.mrf.mxu2 }
 0x477   : > { %v1648_v1 = vmul.f32 1.442695, %v3306_v60  ;;  %vm1636_vm8 = vcmp.gt.f32.partialorder %v3306_v60, 0.0 }
 0x47c   : > { %v1001_v21 = vpop.f32.mrf.mxu3 }
 0x47d   : > { %v1026_v25 = vmul.f32 1.442695, %v1001_v21  ;;  %vm1011_vm1 = vcmp.gt.f32.partialorder %v1001_v21, 0.0 }
 0x47e   : > { %v3311_v47 = vpop.f32.mrf.mxu2 }
 0x48c   : > { %v1306_v55 = vpop.f32.mrf.mxu0 }
 0x48d   : > { %v1334_v50 = vmul.f32 1.442695, %v1306_v55  ;;  %vm1322_vm13 = vcmp.gt.f32.partialorder %v1306_v55, 0.0 }
 0x48f   : > { %2283 = vpow2.f32 %v1334_v50 }
 0x490   : > { %2285 = vpow2.f32 %v1014_v11 }
 0x494   : > { %v1309_v15 = vpop.f32.mrf.mxu0 }
 0x495   : > { %v2284_v2 = vpop.eup %2283  ;;  %v1336_v6 = vmul.f32 1.442695, %v1309_v15  ;;  %vm1323_vm11 = vcmp.gt.f32.partialorder %v1309_v15, 0.0 }
 0x496   : > { %v1952_v31 = vadd.f32 -1.0, %v2284_v2  ;;  %v2286_v63 = vpop.eup %2285 }
 0x497   : > { %2287 = vpow2.f32 %v1336_v6  ;;  %v1933_v3 = vadd.f32 -1.0, %v2286_v63 }
 0x498   : > { %v1354_v26 = vsel %vm1322_vm13, %v1306_v55, %v1952_v31  ;;  %2289 = vpow2.f32 %v1018_v43 }
 0x499   : > { %1720 = vrot.lane.b32.xlu0 %v1354_v26, %s2397_s23  ;;  %2291 = vpow2.f32 %v1020_v51  ;;  %v1037_v17 = vsel %vm1005_vm10, %v3290_v57, %v1933_v3  ;;  %vm1637_vm10 = vcmp.gt.f32.partialorder %v3311_v47, 0.0 }
 0x49a   : > { %v3322_v8 = vpop.f32.mrf.mxu2 }
 0x49c   : > { %v1312_v62 = vpop.f32.mrf.mxu0 }
 0x49d   : > { %v2288_v14 = vpop.eup %2287  ;;  %v1338_v33 = vmul.f32 1.442695, %v1312_v62  ;;  %vm1324_vm4 = vcmp.gt.f32.partialorder %v1312_v62, 0.0 }
 0x49e   : > { %v1953_v36 = vadd.f32 -1.0, %v2288_v14  ;;  %v2290_v4 = vpop.eup %2289 }
 0x49f   : > { %2293 = vpow2.f32 %v1338_v33  ;;  %v2292_v19 = vpop.eup %2291  ;;  %v1935_v59 = vadd.f32 -1.0, %v2290_v4 }
 0x4a0   : > { %v1355_v40 = vsel %vm1323_vm11, %v1309_v15, %v1953_v36  ;;  %2295 = vpow2.f32 %v1644_v10  ;;  %v1936_v22 = vadd.f32 -1.0, %v2292_v19  ;;  %vm1638_vm11 = vcmp.gt.f32.partialorder %v3322_v8, 0.0  ;;  %v3356_v19 = vpop.permute.xlu2 %1712 }
 0x4a1   : > { %1722 = vrot.lane.b32.xlu1 %v1355_v40, %s2397_s23  ;;  %1682 = vrot.lane.b32.xlu0 %v1037_v17, %s2399_s28  ;;  %2297 = vpow2.f32 %v1646_v53  ;;  %v1039_v28 = vsel %vm1007_vm3, %v989_v27, %v1935_v59  ;;  %vm683_vm3 = vcmp.gt.f32.partialorder %v3282_v18, 0.0 }
 0x4a2   : > { %2299 = vpow2.f32 %v1022_v23  ;;  %v1040_v30 = vsel %vm1008_vm14, %v992_v7, %v1936_v22  ;;  %v1629_v24 = vpop.f32.mrf.mxu2  ;;  %vm1784_vm14 = vcmask 785408  }
 0x4a3   : > { %v1654_v13 = vmul.f32 1.442695, %v1629_v24  ;;  %vm1639_vm13 = vcmp.gt.f32.partialorder %v1629_v24, 0.0 }
 0x4a4   : > { %v1315_v34 = vpop.f32.mrf.mxu0 }
 0x4a5   : > { %v2294_v39 = vpop.eup %2293  ;;  %v1340_v57 = vmul.f32 1.442695, %v1315_v34  ;;  %vm1325_vm9 = vcmp.gt.f32.partialorder %v1315_v34, 0.0 }
 0x4a6   : > { %v1954_v37 = vadd.f32 -1.0, %v2294_v39  ;;  %v2296_v32 = vpop.eup %2295  ;;  %v692_v39 = vmul.f32 1.442695, %v3282_v18 }
 0x4a7   : > { %v2298_v12 = vpop.eup %2297  ;;  %2301 = vpow2.f32 %v1340_v57  ;;  %v1966_v29 = vadd.f32 -1.0, %v2296_v32 }
 0x4a8   : > { %v1356_v44 = vsel %vm1324_vm4, %v1312_v62, %v1954_v37  ;;  %v2300_v54 = vpop.eup %2299  ;;  %v1967_v52 = vadd.f32 -1.0, %v2298_v12  ;;  %2303 = vpow2.f32 %v1648_v1  ;;  %vm686_vm4 = vcmp.gt.f32.partialorder %v3295_v56, 0.0 }
 0x4a9   : > { %1686 = vrot.lane.b32.xlu0 %v1039_v28, %s2399_s28  ;;  %1688 = vrot.lane.b32.xlu1 %v1040_v30, %s2399_s28  ;;  %v1937_v9 = vadd.f32 -1.0, %v2300_v54  ;;  %v1666_v20 = vsel %vm1634_vm2, %v3301_v49, %v1966_v29  ;;  %v1650_v49 = vmul.f32 1.442695, %v3311_v47  ;;  %v696_v28 = vmul.f32 1.442695, %v3292_v16 }
 0x4aa   : > { %1724 = vrot.lane.b32.xlu2 %v1356_v44, %s2397_s23  ;;  %v1667_v27 = vsel %vm1635_vm6, %v3303_v42, %v1967_v52  ;;  %v1652_v42 = vmul.f32 1.442695, %v3322_v8  ;;  %v694_v44 = vmul.f32 1.442695, %v3286_v48  ;;  %vm685_vm2 = vcmp.gt.f32.partialorder %v3292_v16, 0.0 }
 0x4ab   : > { %v1041_v50 = vsel %vm1009_vm15, %v3308_v61, %v1937_v9  ;;  %vm684_vm6 = vcmp.gt.f32.partialorder %v3286_v48, 0.0  ;;  %vm682_vm15 = vcmp.gt.f32.partialorder %v3277_v35, 0.0 }
 0x4ac   : > { %v1608_v46 = vpop.f32.mrf.mxu0 }
 0x4ad   : > { %v1640_v38 = vmul.f32 1.442695, %v1608_v46  ;;  %v2302_v55 = vpop.eup %2301  ;;  %vm1632_vm7 = vcmp.gt.f32.partialorder %v1608_v46, 0.0 }
 0x4ae   : > { %v2304_v7 = vpop.eup %2303  ;;  %v1955_v11 = vadd.f32 -1.0, %v2302_v55 }
 0x4af   : > { %2305 = vpow2.f32 %v1640_v38  ;;  %v1968_v2 = vadd.f32 -1.0, %v2304_v7 }
 0x4b0   : > { %2307 = vpow2.f32 %v1024_v0  ;;  %v1357_v31 = vsel %vm1325_vm9, %v1315_v34, %v1955_v11  ;;  %vm689_vm9 = vcmp.gt.f32.partialorder %v3284_v45, 0.0 }
 0x4b1   : > { %1748 = vrot.lane.b32.xlu0 %v1666_v20, %s2398_s27  ;;  %1750 = vrot.lane.b32.xlu1 %v1667_v27, %s2398_s27  ;;  %2309 = vpow2.f32 %v1026_v25  ;;  %v1668_v26 = vsel %vm1636_vm8, %v3306_v60, %v1968_v2  ;;  %vm687_vm8 = vcmp.gt.f32.partialorder %v3274_v58, 0.0 }
 0x4b2   : > { %1690 = vrot.lane.b32.xlu2 %v1041_v50, %s2399_s28  ;;  %2311 = vpow2.f32 %v1654_v13 }
 0x4b3   : > { %2313 = vpow2.f32 %v1650_v49 }
 0x4b4   : > { %2315 = vpow2.f32 %v1652_v42 }
 0x4b5   : > { %v2306_v15 = vpop.eup %2305  ;;  %2317 = vpow2.f32 %v692_v39 }
 0x4b6   : > { %v1964_v6 = vadd.f32 -1.0, %v2306_v15  ;;  %v2308_v43 = vpop.eup %2307 }
 0x4b7   : > { %v2310_v61 = vpop.eup %2309  ;;  %v1938_v3 = vadd.f32 -1.0, %v2308_v43  ;;  %v704_v43 = vmul.f32 1.442695, %v3284_v45 }
 0x4b8   : > { %v1664_v51 = vsel %vm1632_vm7, %v1608_v46, %v1964_v6  ;;  %v2312_v63 = vpop.eup %2311  ;;  %v1939_v62 = vadd.f32 -1.0, %v2310_v61  ;;  %vm688_vm7 = vcmp.gt.f32.partialorder %v3280_v5, 0.0 }
 0x4b9   : > { %1726 = vrot.lane.b32.xlu0 %v1357_v31, %s2397_s23  ;;  %1744 = vrot.lane.b32.xlu1 %v1664_v51, %s2398_s27  ;;  %v1971_v14 = vadd.f32 -1.0, %v2312_v63  ;;  %v2314_v33 = vpop.eup %2313  ;;  %v1042_v10 = vsel %vm1010_vm12, %v3320_v41, %v1938_v3  ;;  %v1719_v41 = vpop.permute.xlu2 %1718  ;;  %s2349_s23 = scalar_lea.hbm %s2348_s22, 64 }
 0x4ba   : > { %1752 = vrot.lane.b32.xlu2 %v1668_v26, %s2398_s27  ;;  %v1043_v36 = vsel %vm1011_vm1, %v1001_v21, %v1939_v62  ;;  %v2316_v53 = vpop.eup %2315  ;;  %v1969_v4 = vadd.f32 -1.0, %v2314_v33  ;;  %v700_v33 = vmul.f32 1.442695, %v3274_v58  ;;  %p2350_p11 = scmp.ne.s32.totalorder %s2348_s22, %s2349_s23  ;;  %p2355_p1 = scmp.lt.s32.totalorder %s2353_s29, %s2349_s23 }
 0x4bb   : > { %v1671_v60 = vsel %vm1639_vm13, %v1629_v24, %v1971_v14  ;;  %v1970_v23 = vadd.f32 -1.0, %v2316_v53  ;;  %v2318_v1 = vpop.eup %2317  ;;  %v690_v24 = vmul.f32 1.442695, %v3277_v35 }
 0x4bc   : > { %v1669_v40 = vsel %vm1637_vm10, %v3311_v47, %v1969_v4  ;;  %v698_v47 = vmul.f32 1.442695, %v3295_v56  ;;  %v1917_v30 = vadd.f32 -1.0, %v2318_v1  ;;  %p2351_p12 = pnand %p2350_p11, %p2470_p5  ;;  %p2356_p2 = por %p2355_p1, %p2354_p0 }
 0x4bd   : > { %v1670_v17 = vsel %vm1638_vm11, %v3322_v8, %v1970_v23  ;;  %v1715_v37 = vpop.permute.xlu0 %1714 }
 0x4be   : > { %2319 = vpow2.f32 %v698_v47  ;;  %v715_v54 = vsel %vm683_vm3, %v3282_v18, %v1917_v30  ;;  %p2352_p13 = pneg %p2351_p12 }
 0x4bf   : > { %2321 = vpow2.f32 %v696_v28 }
 0x4c0   : > { %2323 = vpow2.f32 %v694_v44  ;;  %p2357_p3 = pnand %p2356_p2, %p2352_p13 }
 0x4c1   : > { %1692 = vrot.lane.b32.xlu0 %v1042_v10, %s2399_s28  ;;  %1694 = vrot.lane.b32.xlu1 %v1043_v36, %s2399_s28  ;;  %v1685_v59 = vpop.permute.xlu2 %1684  ;;  %2325 = vpow2.f32 %v690_v24 }
 0x4c2   : > { %1758 = vrot.lane.b32.xlu2 %v1671_v60, %s2398_s27  ;;  %2327 = vpow2.f32 %v704_v43 }
 0x4c4   : > { %v2320_v21 = vpop.eup %2319 }
 0x4c5   : > { %v1717_v34 = vpop.permute.xlu1 %1716  ;;  %v1920_v0 = vadd.f32 -1.0, %v2320_v21  ;;  %v2322_v18 = vpop.eup %2321 }
 0x4c6   : > { %v2324_v25 = vpop.eup %2323  ;;  %v1919_v13 = vadd.f32 -1.0, %v2322_v18 }
 0x4c7   : > { %v718_v20 = vsel %vm686_vm4, %v3295_v56, %v1920_v0  ;;  %v1918_v7 = vadd.f32 -1.0, %v2324_v25  ;;  %v2326_v6 = vpop.eup %2325 }
 0x4c8   : > { %v717_v49 = vsel %vm685_vm2, %v3292_v16, %v1919_v13  ;;  %v1916_v51 = vadd.f32 -1.0, %v2326_v6  ;;  %v2328_v4 = vpop.eup %2327 }
 0x4c9   : > { %1754 = vrot.lane.b32.xlu0 %v1669_v40, %s2398_s27  ;;  %1756 = vrot.lane.b32.xlu1 %v1670_v17, %s2398_s27  ;;  %v1747_v22 = vpop.permute.xlu2 %1746  ;;  %v716_v42 = vsel %vm684_vm6, %v3286_v48, %v1918_v7  ;;  %v702_v48 = vmul.f32 1.442695, %v3280_v5  ;;  %v1923_v40 = vadd.f32 -1.0, %v2328_v4 }
 0x4ca   : > { %v1770_v31 = vsel %vm252_vm0, %v716_v42, %v1685_v59  ;;  %v714_v14 = vsel %vm682_vm15, %v3277_v35, %v1916_v51 }
 0x4cb   : > { %v1778_v61 = vsel %vm504_vm5, %v1770_v31, %v1717_v34  ;;  %2329 = vpow2.f32 %v702_v48  ;;  %v721_v59 = vsel %vm689_vm9, %v3284_v45, %v1923_v40 }
 0x4cc   : > { %2331 = vpow2.f32 %v700_v33 }
 0x4cd   : > { %v1681_v8 = vpop.permute.xlu1 %1680 }
 0x4ce   : > { %v1768_v10 = vsel %vm252_vm0, %v714_v14, %v1681_v8 }
 0x4cf   : > { %v1776_v53 = vsel %vm504_vm5, %v1768_v10, %v3356_v19 }
 0x4d1   : > { %v2330_v17 = vpop.eup %2329 }
 0x4d2   : > { %v2332_v35 = vpop.eup %2331 }
 0x4d3   : > { %v1921_v39 = vadd.f32 -1.0, %v2332_v35 }
 0x4d5   : > { %v719_v1 = vsel %vm687_vm8, %v3274_v58, %v1921_v39 }
 0x504   : > { %v3359_v57 = vpop.permute.xlu2 %1724 }
 0x50b   : > { %v1721_v32 = vpop.permute.xlu0 %1720 }
 0x50c   : > { %v3368_v12 = vpop.permute.xlu2 %1690 }
 0x50d   : > { %v1773_v28 = vsel %vm252_vm0, %v719_v1, %v3368_v12 }
 0x513   : > { %v1683_v29 = vpop.permute.xlu0 %1682  ;;  %v3371_v52 = vpop.permute.xlu1 %1722 }
 0x514   : > { %v1769_v46 = vsel %vm252_vm0, %v715_v54, %v1683_v29  ;;  %v1753_v11 = vpop.permute.xlu2 %1752  ;;  %v1781_v30 = vsel %vm504_vm5, %v1773_v28, %v3371_v52 }
 0x515   : > { %v1777_v9 = vsel %vm504_vm5, %v1769_v46, %v1715_v37 }
 0x516   : > { %v1786_v38 = vsel %vm1784_vm14, %v1777_v9, %v1747_v22 }
 0x517   : > { %1794 = vst [vmem:[%s3377_s8 + $0x8] sm:$0xff] %v1786_v38 }
 0x51b   : > { %v1687_v27 = vpop.permute.xlu0 %1686  ;;  %v1689_v55 = vpop.permute.xlu1 %1688 }
 0x51c   : > { %v1772_v50 = vsel %vm252_vm0, %v718_v20, %v1689_v55  ;;  %v1771_v56 = vsel %vm252_vm0, %v717_v49, %v1687_v27  ;;  %v1759_v37 = vpop.permute.xlu2 %1758 }
 0x51d   : > { %v1780_v15 = vsel %vm504_vm5, %v1772_v50, %v1721_v32  ;;  %v1779_v63 = vsel %vm504_vm5, %v1771_v56, %v1719_v41  ;;  %v1922_v41 = vadd.f32 -1.0, %v2330_v17 }
 0x51e   : > { %v1789_v2 = vsel %vm1784_vm14, %v1780_v15, %v1753_v11 }
 0x51f   : > { %1797 = vst [vmem:[%s3377_s8 + $0x20] sm:$0xff] %v1789_v2  ;;  %v720_v32 = vsel %vm688_vm7, %v3280_v5, %v1922_v41 }
 0x523   : > { %v1749_v26 = vpop.permute.xlu0 %1748  ;;  %v1751_v16 = vpop.permute.xlu1 %1750 }
 0x524   : > { %v1787_v3 = vsel %vm1784_vm14, %v1778_v61, %v1749_v26  ;;  %v1788_v62 = vsel %vm1784_vm14, %v1779_v63, %v1751_v16 }
 0x525   : > { %1795 = vst [vmem:[%s3377_s8 + $0x10] sm:$0xff] %v1787_v3 }
 0x526   : > { %1796 = vst [vmem:[%s3377_s8 + $0x18] sm:$0xff] %v1788_v62 }
 0x52b   : > { %v1727_v36 = vpop.permute.xlu0 %1726  ;;  %v1745_v60 = vpop.permute.xlu1 %1744 }
 0x52c   : > { %v1785_v23 = vsel %vm1784_vm14, %v1776_v53, %v1745_v60 }
 0x52d   : > { %1793 = vst [vmem:[%s3377_s8] sm:$0xff] %v1785_v23 }
 0x533   : > { %v1693_v22 = vpop.permute.xlu0 %1692  ;;  %v1695_v34 = vpop.permute.xlu1 %1694 }
 0x534   : > { %v1775_v19 = vsel %vm252_vm0, %v721_v59, %v1695_v34  ;;  %v1774_v45 = vsel %vm252_vm0, %v720_v32, %v1693_v22 }
 0x535   : > { %v1783_v47 = vsel %vm504_vm5, %v1775_v19, %v1727_v36  ;;  %v1782_v44 = vsel %vm504_vm5, %v1774_v45, %v3359_v57 }
 0x536   : > { %v1792_v8 = vsel %vm1784_vm14, %v1783_v47, %v1759_v37 }
 0x537   : > { %1800 = vst [vmem:[%s3377_s8 + $0x38] sm:$0xff] %v1792_v8 }
 0x53b   : > { %v1755_v5 = vpop.permute.xlu0 %1754  ;;  %v1757_v54 = vpop.permute.xlu1 %1756 }
 0x53c   : > { %v1790_v29 = vsel %vm1784_vm14, %v1781_v30, %v1755_v5  ;;  %v1791_v21 = vsel %vm1784_vm14, %v1782_v44, %v1757_v54 }
 0x53d   : > { %1798 = vst [vmem:[%s3377_s8 + $0x28] sm:$0xff] %v1790_v29 }
 0x53e   : > { %1799 = vst [vmem:[%s3377_s8 + $0x30] sm:$0xff] %v1791_v21 }
 0x53f   : > { %2360 = shalt.err (!%p2357_p3)
}
 0x540   : > { %s2405_s6 = smov 128   ;;  %s2406_s7 = smov 8  }
 0x541   : > { %2000 = dma.vmem_to_hbm [thread:$0]  (%p2470_p5), %s1815_s19, 1024, %s1817_s20, %s1802_s13, %s2405_s6, %s2405_s6, %s2406_s7  }
 0x542 PF: > { %p2006_p4 = scmp.ge.s32.totalorder %s2395_s18, 2  ;;  %s1831_s10 = sand.u32 1, %s2383_s15  }
 0x543   : > { %s1832_s8 = scalar_lea.sflag [#allocation3], %s1831_s10 }
 0x544   : > { %p2003_p7 = pnand %p2006_p4, %p2474_p6 }
 0x546   : > { %p2004_p8 = pneg %p2003_p7 }
 0x548   : > { %2378 = dma.done.wait (%p2004_p8), %s1832_s8, 1024  }
 0x549   : > { %2380 = vsyncadd (%p2004_p8), %s1832_s8, 4294966272  ;;  %p14_p9 = scmp.ge.s32.totalorder %s2457_s21, 4   ;;  %s3470_s15 = smov %s2387_s16 }
 0x54a   : > { %s3471_s16 = smov %s2391_s17  ;;  %s3472_s17 = smov %s2468_s24 }
 0x54b   : > { %s3473_s18 = smov %s2457_s21  ;;  %16 = sbr.rel (!%p14_p9) target bundleno = 3 (0x3), region = 74 }
 0x550   :  { %1838 = vsyncpa [#allocation3], 1 }
 0x551   :  { %1840 = vsyncpa [#allocation3 + $0x1], 1 }

</bundles_post_ra>
